<compile_context>
chip_gen: v7x
topology: tpu7x:2x2x1
jax: 0.10.0
libtpu: 0.0.40
codegen_flags: <defaults>
</compile_context>

<pallas_src>
import functools

import jax
import jax.numpy as jnp
from jax.experimental import pallas as pl
from jax.experimental.pallas import tpu as pltpu


# --------------------------------------------------------------------------
# Fused kernel
# --------------------------------------------------------------------------
def _fused_kernel(v_ref, l_ref,
                  wv_ref, bv_ref, wt_ref, bt_ref,
                  gt_ref, gv_ref, lbt_ref, lbv_ref,
                  wlt_ref, wlv_ref, bl_ref,
                  pre_ref, *, inv_two_d):
    # ---- video phi: spatial mean + Linear fused into one MXU matmul ------
    # 1/(H*W) is folded into wv_ref on the host; K = C*H*W sits on lanes.
    v_emb = jnp.dot(v_ref[...], wv_ref[...],
                    preferred_element_type=jnp.float32) + bv_ref[...]
    v_emb = jnp.maximum(v_emb, 0.0)                              # (TN, Dp) f32

    # ---- text phi: Linear -> ReLU -----------------------------------------
    t_emb = jnp.dot(l_ref[...], wt_ref[...],
                    preferred_element_type=jnp.float32) + bt_ref[...]
    t_emb = jnp.maximum(t_emb, 0.0)                              # (TN, Dp) f32

    # ---- LayerNorm over the virtual concat [t | v] (real width 2*D) ------
    # Padded columns (>= D) are exactly zero, so one-pass sums over Dp lanes
    # equal the sums over the D valid columns.
    s1 = (jnp.sum(t_emb, axis=-1, keepdims=True)
          + jnp.sum(v_emb, axis=-1, keepdims=True))
    s2 = (jnp.sum(t_emb * t_emb, axis=-1, keepdims=True)
          + jnp.sum(v_emb * v_emb, axis=-1, keepdims=True))
    mu = s1 * inv_two_d
    var = s2 * inv_two_d - mu * mu
    inv_std = jax.lax.rsqrt(var + 1e-5)                          # EUP path

    # ---- Linear(2D -> D) as split matmul; consume the text half first ----
    xt = (t_emb - mu) * inv_std * gt_ref[...] + lbt_ref[...]
    y = jnp.dot(xt.astype(wlt_ref.dtype), wlt_ref[...],
                preferred_element_type=jnp.float32)
    xv = (v_emb - mu) * inv_std * gv_ref[...] + lbv_ref[...]
    y = y + jnp.dot(xv.astype(wlv_ref.dtype), wlv_ref[...],
                    preferred_element_type=jnp.float32)
    pre_ref[...] = jnp.maximum(y + bl_ref[...], 0.0).astype(pre_ref.dtype)


# --------------------------------------------------------------------------
# Generation-aware VMEM budgeting and set-dim tiling
# --------------------------------------------------------------------------
def _vmem_budgets():
    """Returns (working-set budget, vmem_limit_bytes, has_128MiB_vmem)."""
    try:
        cap = int(pltpu.get_tpu_info().vmem_capacity_bytes)
    except Exception:
        cap = 64 << 20                       # be conservative if query fails
    if cap > (64 << 20):                     # v5e / v6e: 128 MiB physical VMEM
        return 64 << 20, 96 << 20, True
    return 20 << 20, 28 << 20, False         # v7x-class: 64 MiB physical VMEM


def _choose_tile_n(n, k_video, text_emb, dp, tile_budget_bytes):
    """Pick the set-dim tile from the *real* per-row VMEM working set."""
    if n <= 16:
        return n                             # tiny set: one full block
    per_row = (2 * 2 * k_video               # bf16 video tile, x2 buffers
               + 2 * 2 * text_emb            # bf16 labels tile, x2 buffers
               + 2 * 4 * dp                  # f32 output tile, x2 buffers
               + 6 * 4 * dp)                 # ~6 live (row, Dp) f32 temps
    tn = min(n, max(16, tile_budget_bytes // max(per_row, 1)))
    if tn >= n:                              # keep >= 2 grid steps: megacore
        tn = -(-n // 2)                      # sharding + DMA/compute overlap
    tn = max(16, (tn // 16) * 16)            # bf16 packs 16 rows per sublane grp
    return min(tn, n)


# --------------------------------------------------------------------------
# pallas_call builder
# --------------------------------------------------------------------------
def _bspec(shape, index_map, mode=None):
    if mode is None:
        return pl.BlockSpec(shape, index_map)
    return pl.BlockSpec(shape, index_map, pipeline_mode=mode)


def _make_call(n, tn, k_video, text_emb, dp, inv_two_d,
               single_buffer_consts, deep_video_prefetch, vmem_limit):
    const_mode = pl.Buffered(1) if single_buffer_consts else None
    video_mode = pl.Buffered(3) if deep_video_prefetch else None
    row = lambda i: (i, 0)
    zero = lambda i: (0, 0)
    kernel = functools.partial(_fused_kernel, inv_two_d=inv_two_d)
    return pl.pallas_call(
        kernel,
        out_shape=jax.ShapeDtypeStruct((n, dp), jnp.float32),
        grid=(pl.cdiv(n, tn),),
        in_specs=[
            _bspec((tn, k_video), row, video_mode),    # videos (N, C*HW) bf16
            _bspec((tn, text_emb), row),               # labels bf16
            _bspec((k_video, dp), zero, const_mode),   # expanded wv (scaled)
            _bspec((1, dp), zero, const_mode),         # bv
            _bspec((text_emb, dp), zero, const_mode),  # wt
            _bspec((1, dp), zero, const_mode),         # bt
            _bspec((1, dp), zero, const_mode),         # ln gamma (text half)
            _bspec((1, dp), zero, const_mode),         # ln gamma (video half)
            _bspec((1, dp), zero, const_mode),         # ln beta (text half)
            _bspec((1, dp), zero, const_mode),         # ln beta (video half)
            _bspec((dp, dp), zero, const_mode),        # wl[:D]
            _bspec((dp, dp), zero, const_mode),        # wl[D:]
            _bspec((1, dp), zero, const_mode),         # bl
        ],
        out_specs=pl.BlockSpec((tn, dp), row),
        compiler_params=pltpu.CompilerParams(
            dimension_semantics=("parallel",),
            vmem_limit_bytes=int(vmem_limit)),
    )


# --------------------------------------------------------------------------
# Padding helpers (lane-dense D)
# --------------------------------------------------------------------------
def _pad_last(x, dp):
    pad = dp - x.shape[-1]
    if pad == 0:
        return x
    cfg = [(0, 0)] * (x.ndim - 1) + [(0, pad)]
    return jnp.pad(x, cfg)


def _pad_2d(w, dp):
    return jnp.pad(w, ((0, dp - w.shape[0]), (0, dp - w.shape[1])))


# --------------------------------------------------------------------------
# Forward
# --------------------------------------------------------------------------
@functools.partial(
    jax.jit,
    static_argnames=("tn", "dp", "single_buffer_consts",
                     "deep_video_prefetch", "vmem_limit"))
def _forward_impl(videos, labels, params, *, tn, dp, single_buffer_consts,
                  deep_video_prefetch, vmem_limit):
    n, c, h, w = videos.shape
    hw = h * w
    k_video = c * hw
    d = params["wv"].shape[1]
    text_emb = params["wt"].shape[0]

    # Lane-dense bf16 inputs; fold 1/(H*W) into the video weight and expand it
    # so the spatial reduction happens on the MXU (K = C*HW contraction).
    v2d = videos.reshape(n, k_video).astype(jnp.bfloat16)
    lab = labels.astype(jnp.bfloat16)
    wv_exp = jnp.repeat(_pad_last(params["wv"] * (1.0 / hw), dp),
                        hw, axis=0).astype(jnp.bfloat16)          # (C*HW, Dp)
    wt = _pad_last(params["wt"], dp).astype(jnp.bfloat16)
    wl_t = _pad_2d(params["wl"][:d], dp).astype(jnp.bfloat16)
    wl_v = _pad_2d(params["wl"][d:], dp).astype(jnp.bfloat16)

    bv = _pad_last(params["bv"].reshape(1, d), dp)
    bt = _pad_last(params["bt"].reshape(1, d), dp)
    bl = _pad_last(params["bl"].reshape(1, d), dp)
    g_t = _pad_last(params["ln_g"][:d].reshape(1, d), dp)
    g_v = _pad_last(params["ln_g"][d:].reshape(1, d), dp)
    lb_t = _pad_last(params["ln_b"][:d].reshape(1, d), dp)
    lb_v = _pad_last(params["ln_b"][d:].reshape(1, d), dp)

    call = _make_call(n, tn, k_video, text_emb, dp, 1.0 / (2.0 * d),
                      single_buffer_consts, deep_video_prefetch, vmem_limit)
    prepooled_p = call(v2d, lab, wv_exp, bv, wt, bt,
                       g_t, g_v, lb_t, lb_v, wl_t, wl_v, bl)

    prepooled = prepooled_p[:, :d]
    # SetVideoTextEncoder.pooling_fn = mean over the set dimension.
    # TODO(synk): assumes all N rows are valid set elements (no ragged mask).
    pooled = jnp.mean(prepooled, axis=0, keepdims=True)
    return pooled, prepooled


def set_video_text_encoder_forward(videos, labels, params):
    """Mirrors SetVideoTextEncoder.forward -> (pooled (1, D), prepooled (N, D))."""
    n, c, h, w = videos.shape
    d = params["wv"].shape[1]
    text_emb = params["wt"].shape[0]
    k_video = c * h * w
    dp = -(-d // 128) * 128                       # lane-dense output width

    work_budget, vmem_limit, big_vmem = _vmem_budgets()
    # Constant (weight/bias/affine) footprint, pessimistically double-buffered.
    const_bytes = 2 * (k_video + text_emb + 2 * dp) * dp + 9 * dp * 4
    tile_budget = max(4 << 20, work_budget - 2 * const_bytes)
    tn = _choose_tile_n(n, k_video, text_emb, dp, tile_budget)

    try:
        return _forward_impl(videos, labels, params, tn=tn, dp=dp,
                             single_buffer_consts=True,
                             deep_video_prefetch=big_vmem,
                             vmem_limit=vmem_limit)
    except Exception:
        # Installed JAX may not support BlockSpec(pipeline_mode=...); retry
        # with default double-buffering (correctness unaffected).
        return _forward_impl(videos, labels, params, tn=tn, dp=dp,
                             single_buffer_consts=False,
                             deep_video_prefetch=False,
                             vmem_limit=vmem_limit)


# --------------------------------------------------------------------------
# Pure-JAX reference (f32) for correctness check
# --------------------------------------------------------------------------
def _reference_forward(videos, labels, params):
    n, c, h, w = videos.shape
    pooled_v = jnp.mean(videos.reshape(n, c, h * w), axis=-1)
    v_emb = jnp.maximum(pooled_v @ params["wv"] + params["bv"], 0.0)
    t_emb = jnp.maximum(labels @ params["wt"] + params["bt"], 0.0)
    x = jnp.concatenate([t_emb, v_emb], axis=1)
    mu = jnp.mean(x, axis=-1, keepdims=True)
    var = jnp.mean((x - mu) ** 2, axis=-1, keepdims=True)
    xn = (x - mu) * jax.lax.rsqrt(var + 1e-5)
    xn = xn * params["ln_g"] + params["ln_b"]
    y = jnp.maximum(xn @ params["wl"] + params["bl"], 0.0)
    return jnp.mean(y, axis=0, keepdims=True), y


# --------------------------------------------------------------------------
# Parameter init (deterministic, synthetic)
# --------------------------------------------------------------------------
def init_params(key, *, c, text_emb, emb):
    ks = jax.random.split(key, 4)
    d = emb
    return {
        # SetVideoEncoder phi: Linear(C -> D)
        "wv": jax.random.normal(ks[0], (c, d), jnp.float32) * 0.1,
        "bv": jnp.zeros((d,), jnp.float32),
        # SetTextEncoder phi: Linear(text_emb -> D)
        "wt": jax.random.normal(ks[1], (text_emb, d), jnp.float32) * 0.1,
        "bt": jnp.zeros((d,), jnp.float32),
        # SimplePrePoolNet: LayerNorm(2D) + Linear(2D -> D)
        "ln_g": jnp.ones((2 * d,), jnp.float32),
        "ln_b": jnp.zeros((2 * d,), jnp.float32),
        "wl": jax.random.normal(ks[2], (2 * d, d), jnp.float32) * 0.1,
        "bl": jax.random.normal(ks[3], (d,), jnp.float32) * 0.01,
    }


# --------------------------------------------------------------------------
# Main
# --------------------------------------------------------------------------
if __name__ == "__main__":
    # Small shapes: set size N=8, video NCHW = (8,4,16,16), labels (8,32), D=32
    N, C, H, W = 8, 4, 16, 16
    TEXT_EMB, EMB = 32, 32

    key = jax.random.PRNGKey(0)
    k_v, k_l, k_p = jax.random.split(key, 3)
    videos = jax.random.normal(k_v, (N, C, H, W), jnp.float32)
    labels = jax.random.normal(k_l, (N, TEXT_EMB), jnp.float32)
    params = init_params(k_p, c=C, text_emb=TEXT_EMB, emb=EMB)

    pooled, prepooled = set_video_text_encoder_forward(videos, labels, params)
    jax.block_until_ready((pooled, prepooled))

    assert pooled.shape == (1, EMB)
    assert prepooled.shape == (N, EMB)

    ref_pooled, ref_prepooled = _reference_forward(videos, labels, params)
    assert jnp.allclose(prepooled, ref_prepooled, atol=5e-2, rtol=5e-2)
    assert jnp.allclose(pooled, ref_pooled, atol=5e-2, rtol=5e-2)

    print("KERNEL_OK")
</pallas_src>

<mosaic_0001>
module attributes {stable_mosaic.version = 11 : i64} {
  func.func @_fused_kernel(%arg0: i32, %arg1: memref<8x1024xbf16, #tpu.memory_space<vmem>>, %arg2: memref<8x32xbf16, #tpu.memory_space<vmem>>, %arg3: memref<1024x128xbf16, #tpu.memory_space<vmem>>, %arg4: memref<1x128xf32, #tpu.memory_space<vmem>>, %arg5: memref<32x128xbf16, #tpu.memory_space<vmem>>, %arg6: memref<1x128xf32, #tpu.memory_space<vmem>>, %arg7: memref<1x128xf32, #tpu.memory_space<vmem>>, %arg8: memref<1x128xf32, #tpu.memory_space<vmem>>, %arg9: memref<1x128xf32, #tpu.memory_space<vmem>>, %arg10: memref<1x128xf32, #tpu.memory_space<vmem>>, %arg11: memref<128x128xbf16, #tpu.memory_space<vmem>>, %arg12: memref<128x128xbf16, #tpu.memory_space<vmem>>, %arg13: memref<1x128xf32, #tpu.memory_space<vmem>>, %arg14: memref<8x128xf32, #tpu.memory_space<vmem>>) attributes {dimension_semantics = [#tpu.dimension_semantics<parallel>], iteration_bounds = array<i64: 1>, scalar_prefetch = 0 : i64, scratch_operands = 0 : i64, tpu.core_type = #tpu.core_type<tc>, window_params = [{transform_indices = @transform_0, window_bounds = array<i64: 8, 1024>}, {transform_indices = @transform_1, window_bounds = array<i64: 8, 32>}, {pipeline_mode = #tpu.pipeline_mode<synchronous>, transform_indices = @transform_2, window_bounds = array<i64: 1024, 128>}, {pipeline_mode = #tpu.pipeline_mode<synchronous>, transform_indices = @transform_3, window_bounds = array<i64: 1, 128>}, {pipeline_mode = #tpu.pipeline_mode<synchronous>, transform_indices = @transform_4, window_bounds = array<i64: 32, 128>}, {pipeline_mode = #tpu.pipeline_mode<synchronous>, transform_indices = @transform_5, window_bounds = array<i64: 1, 128>}, {pipeline_mode = #tpu.pipeline_mode<synchronous>, transform_indices = @transform_6, window_bounds = array<i64: 1, 128>}, {pipeline_mode = #tpu.pipeline_mode<synchronous>, transform_indices = @transform_7, window_bounds = array<i64: 1, 128>}, {pipeline_mode = #tpu.pipeline_mode<synchronous>, transform_indices = @transform_8, window_bounds = array<i64: 1, 128>}, {pipeline_mode = #tpu.pipeline_mode<synchronous>, transform_indices = @transform_9, window_bounds = array<i64: 1, 128>}, {pipeline_mode = #tpu.pipeline_mode<synchronous>, transform_indices = @transform_10, window_bounds = array<i64: 128, 128>}, {pipeline_mode = #tpu.pipeline_mode<synchronous>, transform_indices = @transform_11, window_bounds = array<i64: 128, 128>}, {pipeline_mode = #tpu.pipeline_mode<synchronous>, transform_indices = @transform_12, window_bounds = array<i64: 1, 128>}, {transform_indices = @transform_13, window_bounds = array<i64: 8, 128>}]} {
    %c0 = arith.constant 0 : index
    %c0_0 = arith.constant 0 : index
    %0 = vector.load %arg1[%c0, %c0_0] : memref<8x1024xbf16, #tpu.memory_space<vmem>>, vector<8x1024xbf16>
    %c0_1 = arith.constant 0 : index
    %c0_2 = arith.constant 0 : index
    %1 = vector.load %arg3[%c0_1, %c0_2] : memref<1024x128xbf16, #tpu.memory_space<vmem>>, vector<1024x128xbf16>
    %cst = arith.constant dense<0.000000e+00> : vector<8x128xf32>
    %2 = tpu.matmul %0, %1, %cst {dimension_numbers = #tpu.dot_dimension_numbers<[1], [0], [0], [1], [0, 0, 1, 1], [], []>} : vector<8x1024xbf16>, vector<1024x128xbf16>, vector<8x128xf32> -> vector<8x128xf32>
    %c0_3 = arith.constant 0 : index
    %c0_4 = arith.constant 0 : index
    %3 = vector.load %arg4[%c0_3, %c0_4] : memref<1x128xf32, #tpu.memory_space<vmem>>, vector<1x128xf32>
    %4 = vector.broadcast %3 : vector<1x128xf32> to vector<8x128xf32>
    %5 = arith.addf %2, %4 : vector<8x128xf32>
    %cst_5 = arith.constant 0.000000e+00 : f32
    %6 = vector.broadcast %cst_5 : f32 to vector<8x128xf32>
    %7 = arith.maximumf %5, %6 : vector<8x128xf32>
    %c0_6 = arith.constant 0 : index
    %c0_7 = arith.constant 0 : index
    %8 = vector.load %arg2[%c0_6, %c0_7] : memref<8x32xbf16, #tpu.memory_space<vmem>>, vector<8x32xbf16>
    %c0_8 = arith.constant 0 : index
    %c0_9 = arith.constant 0 : index
    %9 = vector.load %arg5[%c0_8, %c0_9] : memref<32x128xbf16, #tpu.memory_space<vmem>>, vector<32x128xbf16>
    %cst_10 = arith.constant dense<0.000000e+00> : vector<8x128xf32>
    %10 = tpu.matmul %8, %9, %cst_10 {dimension_numbers = #tpu.dot_dimension_numbers<[1], [0], [0], [1], [0, 0, 1, 1], [], []>} : vector<8x32xbf16>, vector<32x128xbf16>, vector<8x128xf32> -> vector<8x128xf32>
    %c0_11 = arith.constant 0 : index
    %c0_12 = arith.constant 0 : index
    %11 = vector.load %arg6[%c0_11, %c0_12] : memref<1x128xf32, #tpu.memory_space<vmem>>, vector<1x128xf32>
    %12 = vector.broadcast %11 : vector<1x128xf32> to vector<8x128xf32>
    %13 = arith.addf %10, %12 : vector<8x128xf32>
    %cst_13 = arith.constant 0.000000e+00 : f32
    %14 = vector.broadcast %cst_13 : f32 to vector<8x128xf32>
    %15 = arith.maximumf %13, %14 : vector<8x128xf32>
    %cst_14 = arith.constant dense<0.000000e+00> : vector<8xf32>
    %16 = vector.multi_reduction <add>, %15, %cst_14 [1] : vector<8x128xf32> to vector<8xf32>
    %17 = vector.shape_cast %16 : vector<8xf32> to vector<8x1xf32>
    %cst_15 = arith.constant dense<0.000000e+00> : vector<8xf32>
    %18 = vector.multi_reduction <add>, %7, %cst_15 [1] : vector<8x128xf32> to vector<8xf32>
    %19 = vector.shape_cast %18 : vector<8xf32> to vector<8x1xf32>
    %20 = arith.addf %17, %19 : vector<8x1xf32>
    %21 = arith.mulf %15, %15 : vector<8x128xf32>
    %cst_16 = arith.constant dense<0.000000e+00> : vector<8xf32>
    %22 = vector.multi_reduction <add>, %21, %cst_16 [1] : vector<8x128xf32> to vector<8xf32>
    %23 = vector.shape_cast %22 : vector<8xf32> to vector<8x1xf32>
    %24 = arith.mulf %7, %7 : vector<8x128xf32>
    %cst_17 = arith.constant dense<0.000000e+00> : vector<8xf32>
    %25 = vector.multi_reduction <add>, %24, %cst_17 [1] : vector<8x128xf32> to vector<8xf32>
    %26 = vector.shape_cast %25 : vector<8xf32> to vector<8x1xf32>
    %27 = arith.addf %23, %26 : vector<8x1xf32>
    %cst_18 = arith.constant 1.562500e-02 : f32
    %28 = vector.broadcast %cst_18 : f32 to vector<8x1xf32>
    %29 = arith.mulf %20, %28 : vector<8x1xf32>
    %cst_19 = arith.constant 1.562500e-02 : f32
    %30 = vector.broadcast %cst_19 : f32 to vector<8x1xf32>
    %31 = arith.mulf %27, %30 : vector<8x1xf32>
    %32 = arith.mulf %29, %29 : vector<8x1xf32>
    %33 = arith.subf %31, %32 : vector<8x1xf32>
    %cst_20 = arith.constant 9.99999974E-6 : f32
    %34 = vector.broadcast %cst_20 : f32 to vector<8x1xf32>
    %35 = arith.addf %33, %34 : vector<8x1xf32>
    %36 = math.rsqrt %35 : vector<8x1xf32>
    %37 = vector.broadcast %29 : vector<8x1xf32> to vector<8x128xf32>
    %38 = arith.subf %15, %37 : vector<8x128xf32>
    %39 = vector.broadcast %36 : vector<8x1xf32> to vector<8x128xf32>
    %40 = arith.mulf %38, %39 : vector<8x128xf32>
    %c0_21 = arith.constant 0 : index
    %c0_22 = arith.constant 0 : index
    %41 = vector.load %arg7[%c0_21, %c0_22] : memref<1x128xf32, #tpu.memory_space<vmem>>, vector<1x128xf32>
    %42 = vector.broadcast %41 : vector<1x128xf32> to vector<8x128xf32>
    %43 = arith.mulf %40, %42 : vector<8x128xf32>
    %c0_23 = arith.constant 0 : index
    %c0_24 = arith.constant 0 : index
    %44 = vector.load %arg9[%c0_23, %c0_24] : memref<1x128xf32, #tpu.memory_space<vmem>>, vector<1x128xf32>
    %45 = vector.broadcast %44 : vector<1x128xf32> to vector<8x128xf32>
    %46 = arith.addf %43, %45 : vector<8x128xf32>
    %47 = arith.truncf %46 : vector<8x128xf32> to vector<8x128xbf16>
    %c0_25 = arith.constant 0 : index
    %c0_26 = arith.constant 0 : index
    %48 = vector.load %arg11[%c0_25, %c0_26] : memref<128x128xbf16, #tpu.memory_space<vmem>>, vector<128x128xbf16>
    %cst_27 = arith.constant dense<0.000000e+00> : vector<8x128xf32>
    %49 = tpu.matmul %47, %48, %cst_27 {dimension_numbers = #tpu.dot_dimension_numbers<[1], [0], [0], [1], [0, 0, 1, 1], [], []>} : vector<8x128xbf16>, vector<128x128xbf16>, vector<8x128xf32> -> vector<8x128xf32>
    %50 = vector.broadcast %29 : vector<8x1xf32> to vector<8x128xf32>
    %51 = arith.subf %7, %50 : vector<8x128xf32>
    %52 = vector.broadcast %36 : vector<8x1xf32> to vector<8x128xf32>
    %53 = arith.mulf %51, %52 : vector<8x128xf32>
    %c0_28 = arith.constant 0 : index
    %c0_29 = arith.constant 0 : index
    %54 = vector.load %arg8[%c0_28, %c0_29] : memref<1x128xf32, #tpu.memory_space<vmem>>, vector<1x128xf32>
    %55 = vector.broadcast %54 : vector<1x128xf32> to vector<8x128xf32>
    %56 = arith.mulf %53, %55 : vector<8x128xf32>
    %c0_30 = arith.constant 0 : index
    %c0_31 = arith.constant 0 : index
    %57 = vector.load %arg10[%c0_30, %c0_31] : memref<1x128xf32, #tpu.memory_space<vmem>>, vector<1x128xf32>
    %58 = vector.broadcast %57 : vector<1x128xf32> to vector<8x128xf32>
    %59 = arith.addf %56, %58 : vector<8x128xf32>
    %60 = arith.truncf %59 : vector<8x128xf32> to vector<8x128xbf16>
    %c0_32 = arith.constant 0 : index
    %c0_33 = arith.constant 0 : index
    %61 = vector.load %arg12[%c0_32, %c0_33] : memref<128x128xbf16, #tpu.memory_space<vmem>>, vector<128x128xbf16>
    %cst_34 = arith.constant dense<0.000000e+00> : vector<8x128xf32>
    %62 = tpu.matmul %60, %61, %cst_34 {dimension_numbers = #tpu.dot_dimension_numbers<[1], [0], [0], [1], [0, 0, 1, 1], [], []>} : vector<8x128xbf16>, vector<128x128xbf16>, vector<8x128xf32> -> vector<8x128xf32>
    %63 = arith.addf %49, %62 : vector<8x128xf32>
    %c0_35 = arith.constant 0 : index
    %c0_36 = arith.constant 0 : index
    %64 = vector.load %arg13[%c0_35, %c0_36] : memref<1x128xf32, #tpu.memory_space<vmem>>, vector<1x128xf32>
    %65 = vector.broadcast %64 : vector<1x128xf32> to vector<8x128xf32>
    %66 = arith.addf %63, %65 : vector<8x128xf32>
    %cst_37 = arith.constant 0.000000e+00 : f32
    %67 = vector.broadcast %cst_37 : f32 to vector<8x128xf32>
    %68 = arith.maximumf %66, %67 : vector<8x128xf32>
    %c0_38 = arith.constant 0 : index
    %c0_39 = arith.constant 0 : index
    %69 = vector.load %arg14[%c0_38, %c0_39] : memref<8x128xf32, #tpu.memory_space<vmem>>, vector<8x128xf32>
    tpu.vector_store %arg14[%c0_38, %c0_39], %68 {strides = array<i32>} : memref<8x128xf32, #tpu.memory_space<vmem>>, vector<8x128xf32>,
    return
  }
  func.func @transform_0(%arg0: i32) -> (i32, i32) {
    %c0_i32 = arith.constant 0 : i32
    %c0_i32_0 = arith.constant 0 : i32
    return %arg0, %c0_i32 : i32, i32
  }
  func.func @transform_1(%arg0: i32) -> (i32, i32) {
    %c0_i32 = arith.constant 0 : i32
    %c0_i32_0 = arith.constant 0 : i32
    return %arg0, %c0_i32 : i32, i32
  }
  func.func @transform_2(%arg0: i32) -> (i32, i32) {
    %c0_i32 = arith.constant 0 : i32
    %c0_i32_0 = arith.constant 0 : i32
    %c0_i32_1 = arith.constant 0 : i32
    return %c0_i32, %c0_i32_0 : i32, i32
  }
  func.func @transform_3(%arg0: i32) -> (i32, i32) {
    %c0_i32 = arith.constant 0 : i32
    %c0_i32_0 = arith.constant 0 : i32
    %c0_i32_1 = arith.constant 0 : i32
    return %c0_i32, %c0_i32_0 : i32, i32
  }
  func.func @transform_4(%arg0: i32) -> (i32, i32) {
    %c0_i32 = arith.constant 0 : i32
    %c0_i32_0 = arith.constant 0 : i32
    %c0_i32_1 = arith.constant 0 : i32
    return %c0_i32, %c0_i32_0 : i32, i32
  }
  func.func @transform_5(%arg0: i32) -> (i32, i32) {
    %c0_i32 = arith.constant 0 : i32
    %c0_i32_0 = arith.constant 0 : i32
    %c0_i32_1 = arith.constant 0 : i32
    return %c0_i32, %c0_i32_0 : i32, i32
  }
  func.func @transform_6(%arg0: i32) -> (i32, i32) {
    %c0_i32 = arith.constant 0 : i32
    %c0_i32_0 = arith.constant 0 : i32
    %c0_i32_1 = arith.constant 0 : i32
    return %c0_i32, %c0_i32_0 : i32, i32
  }
  func.func @transform_7(%arg0: i32) -> (i32, i32) {
    %c0_i32 = arith.constant 0 : i32
    %c0_i32_0 = arith.constant 0 : i32
    %c0_i32_1 = arith.constant 0 : i32
    return %c0_i32, %c0_i32_0 : i32, i32
  }
  func.func @transform_8(%arg0: i32) -> (i32, i32) {
    %c0_i32 = arith.constant 0 : i32
    %c0_i32_0 = arith.constant 0 : i32
    %c0_i32_1 = arith.constant 0 : i32
    return %c0_i32, %c0_i32_0 : i32, i32
  }
  func.func @transform_9(%arg0: i32) -> (i32, i32) {
    %c0_i32 = arith.constant 0 : i32
    %c0_i32_0 = arith.constant 0 : i32
    %c0_i32_1 = arith.constant 0 : i32
    return %c0_i32, %c0_i32_0 : i32, i32
  }
  func.func @transform_10(%arg0: i32) -> (i32, i32) {
    %c0_i32 = arith.constant 0 : i32
    %c0_i32_0 = arith.constant 0 : i32
    %c0_i32_1 = arith.constant 0 : i32
    return %c0_i32, %c0_i32_0 : i32, i32
  }
  func.func @transform_11(%arg0: i32) -> (i32, i32) {
    %c0_i32 = arith.constant 0 : i32
    %c0_i32_0 = arith.constant 0 : i32
    %c0_i32_1 = arith.constant 0 : i32
    return %c0_i32, %c0_i32_0 : i32, i32
  }
  func.func @transform_12(%arg0: i32) -> (i32, i32) {
    %c0_i32 = arith.constant 0 : i32
    %c0_i32_0 = arith.constant 0 : i32
    %c0_i32_1 = arith.constant 0 : i32
    return %c0_i32, %c0_i32_0 : i32, i32
  }
  func.func @transform_13(%arg0: i32) -> (i32, i32) {
    %c0_i32 = arith.constant 0 : i32
    %c0_i32_0 = arith.constant 0 : i32
    return %arg0, %c0_i32 : i32, i32
  }
}

module attributes {stable_mosaic.version = 11 : i64} {
  func.func @_fused_kernel(%arg0: i32, %arg1: memref<8x1024xbf16, #tpu.memory_space<vmem>>, %arg2: memref<8x32xbf16, #tpu.memory_space<vmem>>, %arg3: memref<1024x128xbf16, #tpu.memory_space<vmem>>, %arg4: memref<1x128xf32, #tpu.memory_space<vmem>>, %arg5: memref<32x128xbf16, #tpu.memory_space<vmem>>, %arg6: memref<1x128xf32, #tpu.memory_space<vmem>>, %arg7: memref<1x128xf32, #tpu.memory_space<vmem>>, %arg8: memref<1x128xf32, #tpu.memory_space<vmem>>, %arg9: memref<1x128xf32, #tpu.memory_space<vmem>>, %arg10: memref<1x128xf32, #tpu.memory_space<vmem>>, %arg11: memref<128x128xbf16, #tpu.memory_space<vmem>>, %arg12: memref<128x128xbf16, #tpu.memory_space<vmem>>, %arg13: memref<1x128xf32, #tpu.memory_space<vmem>>, %arg14: memref<8x128xf32, #tpu.memory_space<vmem>>) attributes {dimension_semantics = [#tpu.dimension_semantics<parallel>], iteration_bounds = array<i64: 1>, scalar_prefetch = 0 : i64, scratch_operands = 0 : i64, tpu.core_type = #tpu.core_type<tc>, window_params = [{transform_indices = @transform_0, window_bounds = array<i64: 8, 1024>}, {transform_indices = @transform_1, window_bounds = array<i64: 8, 32>}, {pipeline_mode = #tpu.pipeline_mode<synchronous>, transform_indices = @transform_2, window_bounds = array<i64: 1024, 128>}, {pipeline_mode = #tpu.pipeline_mode<synchronous>, transform_indices = @transform_3, window_bounds = array<i64: 1, 128>}, {pipeline_mode = #tpu.pipeline_mode<synchronous>, transform_indices = @transform_4, window_bounds = array<i64: 32, 128>}, {pipeline_mode = #tpu.pipeline_mode<synchronous>, transform_indices = @transform_5, window_bounds = array<i64: 1, 128>}, {pipeline_mode = #tpu.pipeline_mode<synchronous>, transform_indices = @transform_6, window_bounds = array<i64: 1, 128>}, {pipeline_mode = #tpu.pipeline_mode<synchronous>, transform_indices = @transform_7, window_bounds = array<i64: 1, 128>}, {pipeline_mode = #tpu.pipeline_mode<synchronous>, transform_indices = @transform_8, window_bounds = array<i64: 1, 128>}, {pipeline_mode = #tpu.pipeline_mode<synchronous>, transform_indices = @transform_9, window_bounds = array<i64: 1, 128>}, {pipeline_mode = #tpu.pipeline_mode<synchronous>, transform_indices = @transform_10, window_bounds = array<i64: 128, 128>}, {pipeline_mode = #tpu.pipeline_mode<synchronous>, transform_indices = @transform_11, window_bounds = array<i64: 128, 128>}, {pipeline_mode = #tpu.pipeline_mode<synchronous>, transform_indices = @transform_12, window_bounds = array<i64: 1, 128>}, {transform_indices = @transform_13, window_bounds = array<i64: 8, 128>}]} {
    %c0 = arith.constant 0 : index
    %c0_0 = arith.constant 0 : index
    %0 = vector.load %arg1[%c0, %c0_0] : memref<8x1024xbf16, #tpu.memory_space<vmem>>, vector<8x1024xbf16>
    %c0_1 = arith.constant 0 : index
    %c0_2 = arith.constant 0 : index
    %1 = vector.load %arg3[%c0_1, %c0_2] : memref<1024x128xbf16, #tpu.memory_space<vmem>>, vector<1024x128xbf16>
    %cst = arith.constant dense<0.000000e+00> : vector<8x128xf32>
    %2 = tpu.matmul %0, %1, %cst {dimension_numbers = #tpu.dot_dimension_numbers<[1], [0], [0], [1], [0, 0, 1, 1], [], []>} : vector<8x1024xbf16>, vector<1024x128xbf16>, vector<8x128xf32> -> vector<8x128xf32>
    %c0_3 = arith.constant 0 : index
    %c0_4 = arith.constant 0 : index
    %3 = vector.load %arg4[%c0_3, %c0_4] : memref<1x128xf32, #tpu.memory_space<vmem>>, vector<1x128xf32>
    %4 = vector.broadcast %3 : vector<1x128xf32> to vector<8x128xf32>
    %5 = arith.addf %2, %4 : vector<8x128xf32>
    %cst_5 = arith.constant 0.000000e+00 : f32
    %6 = vector.broadcast %cst_5 : f32 to vector<8x128xf32>
    %7 = arith.maximumf %5, %6 : vector<8x128xf32>
    %c0_6 = arith.constant 0 : index
    %c0_7 = arith.constant 0 : index
    %8 = vector.load %arg2[%c0_6, %c0_7] : memref<8x32xbf16, #tpu.memory_space<vmem>>, vector<8x32xbf16>
    %c0_8 = arith.constant 0 : index
    %c0_9 = arith.constant 0 : index
    %9 = vector.load %arg5[%c0_8, %c0_9] : memref<32x128xbf16, #tpu.memory_space<vmem>>, vector<32x128xbf16>
    %cst_10 = arith.constant dense<0.000000e+00> : vector<8x128xf32>
    %10 = tpu.matmul %8, %9, %cst_10 {dimension_numbers = #tpu.dot_dimension_numbers<[1], [0], [0], [1], [0, 0, 1, 1], [], []>} : vector<8x32xbf16>, vector<32x128xbf16>, vector<8x128xf32> -> vector<8x128xf32>
    %c0_11 = arith.constant 0 : index
    %c0_12 = arith.constant 0 : index
    %11 = vector.load %arg6[%c0_11, %c0_12] : memref<1x128xf32, #tpu.memory_space<vmem>>, vector<1x128xf32>
    %12 = vector.broadcast %11 : vector<1x128xf32> to vector<8x128xf32>
    %13 = arith.addf %10, %12 : vector<8x128xf32>
    %cst_13 = arith.constant 0.000000e+00 : f32
    %14 = vector.broadcast %cst_13 : f32 to vector<8x128xf32>
    %15 = arith.maximumf %13, %14 : vector<8x128xf32>
    %cst_14 = arith.constant dense<0.000000e+00> : vector<8xf32>
    %16 = vector.multi_reduction <add>, %15, %cst_14 [1] : vector<8x128xf32> to vector<8xf32>
    %17 = vector.shape_cast %16 : vector<8xf32> to vector<8x1xf32>
    %cst_15 = arith.constant dense<0.000000e+00> : vector<8xf32>
    %18 = vector.multi_reduction <add>, %7, %cst_15 [1] : vector<8x128xf32> to vector<8xf32>
    %19 = vector.shape_cast %18 : vector<8xf32> to vector<8x1xf32>
    %20 = arith.addf %17, %19 : vector<8x1xf32>
    %21 = arith.mulf %15, %15 : vector<8x128xf32>
    %cst_16 = arith.constant dense<0.000000e+00> : vector<8xf32>
    %22 = vector.multi_reduction <add>, %21, %cst_16 [1] : vector<8x128xf32> to vector<8xf32>
    %23 = vector.shape_cast %22 : vector<8xf32> to vector<8x1xf32>
    %24 = arith.mulf %7, %7 : vector<8x128xf32>
    %cst_17 = arith.constant dense<0.000000e+00> : vector<8xf32>
    %25 = vector.multi_reduction <add>, %24, %cst_17 [1] : vector<8x128xf32> to vector<8xf32>
    %26 = vector.shape_cast %25 : vector<8xf32> to vector<8x1xf32>
    %27 = arith.addf %23, %26 : vector<8x1xf32>
    %cst_18 = arith.constant 1.562500e-02 : f32
    %28 = vector.broadcast %cst_18 : f32 to vector<8x1xf32>
    %29 = arith.mulf %20, %28 : vector<8x1xf32>
    %cst_19 = arith.constant 1.562500e-02 : f32
    %30 = vector.broadcast %cst_19 : f32 to vector<8x1xf32>
    %31 = arith.mulf %27, %30 : vector<8x1xf32>
    %32 = arith.mulf %29, %29 : vector<8x1xf32>
    %33 = arith.subf %31, %32 : vector<8x1xf32>
    %cst_20 = arith.constant 9.99999974E-6 : f32
    %34 = vector.broadcast %cst_20 : f32 to vector<8x1xf32>
    %35 = arith.addf %33, %34 : vector<8x1xf32>
    %36 = math.rsqrt %35 : vector<8x1xf32>
    %37 = vector.broadcast %29 : vector<8x1xf32> to vector<8x128xf32>
    %38 = arith.subf %15, %37 : vector<8x128xf32>
    %39 = vector.broadcast %36 : vector<8x1xf32> to vector<8x128xf32>
    %40 = arith.mulf %38, %39 : vector<8x128xf32>
    %c0_21 = arith.constant 0 : index
    %c0_22 = arith.constant 0 : index
    %41 = vector.load %arg7[%c0_21, %c0_22] : memref<1x128xf32, #tpu.memory_space<vmem>>, vector<1x128xf32>
    %42 = vector.broadcast %41 : vector<1x128xf32> to vector<8x128xf32>
    %43 = arith.mulf %40, %42 : vector<8x128xf32>
    %c0_23 = arith.constant 0 : index
    %c0_24 = arith.constant 0 : index
    %44 = vector.load %arg9[%c0_23, %c0_24] : memref<1x128xf32, #tpu.memory_space<vmem>>, vector<1x128xf32>
    %45 = vector.broadcast %44 : vector<1x128xf32> to vector<8x128xf32>
    %46 = arith.addf %43, %45 : vector<8x128xf32>
    %47 = arith.truncf %46 : vector<8x128xf32> to vector<8x128xbf16>
    %c0_25 = arith.constant 0 : index
    %c0_26 = arith.constant 0 : index
    %48 = vector.load %arg11[%c0_25, %c0_26] : memref<128x128xbf16, #tpu.memory_space<vmem>>, vector<128x128xbf16>
    %cst_27 = arith.constant dense<0.000000e+00> : vector<8x128xf32>
    %49 = tpu.matmul %47, %48, %cst_27 {dimension_numbers = #tpu.dot_dimension_numbers<[1], [0], [0], [1], [0, 0, 1, 1], [], []>} : vector<8x128xbf16>, vector<128x128xbf16>, vector<8x128xf32> -> vector<8x128xf32>
    %50 = vector.broadcast %29 : vector<8x1xf32> to vector<8x128xf32>
    %51 = arith.subf %7, %50 : vector<8x128xf32>
    %52 = vector.broadcast %36 : vector<8x1xf32> to vector<8x128xf32>
    %53 = arith.mulf %51, %52 : vector<8x128xf32>
    %c0_28 = arith.constant 0 : index
    %c0_29 = arith.constant 0 : index
    %54 = vector.load %arg8[%c0_28, %c0_29] : memref<1x128xf32, #tpu.memory_space<vmem>>, vector<1x128xf32>
    %55 = vector.broadcast %54 : vector<1x128xf32> to vector<8x128xf32>
    %56 = arith.mulf %53, %55 : vector<8x128xf32>
    %c0_30 = arith.constant 0 : index
    %c0_31 = arith.constant 0 : index
    %57 = vector.load %arg10[%c0_30, %c0_31] : memref<1x128xf32, #tpu.memory_space<vmem>>, vector<1x128xf32>
    %58 = vector.broadcast %57 : vector<1x128xf32> to vector<8x128xf32>
    %59 = arith.addf %56, %58 : vector<8x128xf32>
    %60 = arith.truncf %59 : vector<8x128xf32> to vector<8x128xbf16>
    %c0_32 = arith.constant 0 : index
    %c0_33 = arith.constant 0 : index
    %61 = vector.load %arg12[%c0_32, %c0_33] : memref<128x128xbf16, #tpu.memory_space<vmem>>, vector<128x128xbf16>
    %cst_34 = arith.constant dense<0.000000e+00> : vector<8x128xf32>
    %62 = tpu.matmul %60, %61, %cst_34 {dimension_numbers = #tpu.dot_dimension_numbers<[1], [0], [0], [1], [0, 0, 1, 1], [], []>} : vector<8x128xbf16>, vector<128x128xbf16>, vector<8x128xf32> -> vector<8x128xf32>
    %63 = arith.addf %49, %62 : vector<8x128xf32>
    %c0_35 = arith.constant 0 : index
    %c0_36 = arith.constant 0 : index
    %64 = vector.load %arg13[%c0_35, %c0_36] : memref<1x128xf32, #tpu.memory_space<vmem>>, vector<1x128xf32>
    %65 = vector.broadcast %64 : vector<1x128xf32> to vector<8x128xf32>
    %66 = arith.addf %63, %65 : vector<8x128xf32>
    %cst_37 = arith.constant 0.000000e+00 : f32
    %67 = vector.broadcast %cst_37 : f32 to vector<8x128xf32>
    %68 = arith.maximumf %66, %67 : vector<8x128xf32>
    %c0_38 = arith.constant 0 : index
    %c0_39 = arith.constant 0 : index
    %69 = vector.load %arg14[%c0_38, %c0_39] : memref<8x128xf32, #tpu.memory_space<vmem>>, vector<8x128xf32>
    tpu.vector_store %arg14[%c0_38, %c0_39], %68 {strides = array<i32>} : memref<8x128xf32, #tpu.memory_space<vmem>>, vector<8x128xf32>,
    return
  }
  func.func @transform_0(%arg0: i32) -> (i32, i32) {
    %c0_i32 = arith.constant 0 : i32
    %c0_i32_0 = arith.constant 0 : i32
    return %arg0, %c0_i32 : i32, i32
  }
  func.func @transform_1(%arg0: i32) -> (i32, i32) {
    %c0_i32 = arith.constant 0 : i32
    %c0_i32_0 = arith.constant 0 : i32
    return %arg0, %c0_i32 : i32, i32
  }
  func.func @transform_2(%arg0: i32) -> (i32, i32) {
    %c0_i32 = arith.constant 0 : i32
    %c0_i32_0 = arith.constant 0 : i32
    %c0_i32_1 = arith.constant 0 : i32
    return %c0_i32, %c0_i32_0 : i32, i32
  }
  func.func @transform_3(%arg0: i32) -> (i32, i32) {
    %c0_i32 = arith.constant 0 : i32
    %c0_i32_0 = arith.constant 0 : i32
    %c0_i32_1 = arith.constant 0 : i32
    return %c0_i32, %c0_i32_0 : i32, i32
  }
  func.func @transform_4(%arg0: i32) -> (i32, i32) {
    %c0_i32 = arith.constant 0 : i32
    %c0_i32_0 = arith.constant 0 : i32
    %c0_i32_1 = arith.constant 0 : i32
    return %c0_i32, %c0_i32_0 : i32, i32
  }
  func.func @transform_5(%arg0: i32) -> (i32, i32) {
    %c0_i32 = arith.constant 0 : i32
    %c0_i32_0 = arith.constant 0 : i32
    %c0_i32_1 = arith.constant 0 : i32
    return %c0_i32, %c0_i32_0 : i32, i32
  }
  func.func @transform_6(%arg0: i32) -> (i32, i32) {
    %c0_i32 = arith.constant 0 : i32
    %c0_i32_0 = arith.constant 0 : i32
    %c0_i32_1 = arith.constant 0 : i32
    return %c0_i32, %c0_i32_0 : i32, i32
  }
  func.func @transform_7(%arg0: i32) -> (i32, i32) {
    %c0_i32 = arith.constant 0 : i32
    %c0_i32_0 = arith.constant 0 : i32
    %c0_i32_1 = arith.constant 0 : i32
    return %c0_i32, %c0_i32_0 : i32, i32
  }
  func.func @transform_8(%arg0: i32) -> (i32, i32) {
    %c0_i32 = arith.constant 0 : i32
    %c0_i32_0 = arith.constant 0 : i32
    %c0_i32_1 = arith.constant 0 : i32
    return %c0_i32, %c0_i32_0 : i32, i32
  }
  func.func @transform_9(%arg0: i32) -> (i32, i32) {
    %c0_i32 = arith.constant 0 : i32
    %c0_i32_0 = arith.constant 0 : i32
    %c0_i32_1 = arith.constant 0 : i32
    return %c0_i32, %c0_i32_0 : i32, i32
  }
  func.func @transform_10(%arg0: i32) -> (i32, i32) {
    %c0_i32 = arith.constant 0 : i32
    %c0_i32_0 = arith.constant 0 : i32
    %c0_i32_1 = arith.constant 0 : i32
    return %c0_i32, %c0_i32_0 : i32, i32
  }
  func.func @transform_11(%arg0: i32) -> (i32, i32) {
    %c0_i32 = arith.constant 0 : i32
    %c0_i32_0 = arith.constant 0 : i32
    %c0_i32_1 = arith.constant 0 : i32
    return %c0_i32, %c0_i32_0 : i32, i32
  }
  func.func @transform_12(%arg0: i32) -> (i32, i32) {
    %c0_i32 = arith.constant 0 : i32
    %c0_i32_0 = arith.constant 0 : i32
    %c0_i32_1 = arith.constant 0 : i32
    return %c0_i32, %c0_i32_0 : i32, i32
  }
  func.func @transform_13(%arg0: i32) -> (i32, i32) {
    %c0_i32 = arith.constant 0 : i32
    %c0_i32_0 = arith.constant 0 : i32
    return %arg0, %c0_i32 : i32, i32
  }
}

</mosaic_0001>

<bundles_post_ra>
// kernel: _forward_impl.1
= control target key start
LH: loop header
LB: loop body
LE: loop exit
PB: predicated region body
PF: predicated region fallthrough
CT: control target
= control target key end

     0   :  { %vm1454_vm0 = vmmov 0   ;;  %vm781_vm1 = vcmask 261120   ;;  %s1843_s2 = inlined_call_operand.vmem [shape: bf16[1024,128], index: 2, kind: input, shape index: {}]   ;;  %s1844_s0 = inlined_call_operand.vmem [shape: bf16[8,1024], index: 0, kind: input, shape index: {}]   ;;  %s1845_s4 = inlined_call_operand.vmem [shape: bf16[32,128], index: 4, kind: input, shape index: {}]   ;;  %s1846_s1 = inlined_call_operand.vmem [shape: bf16[8,32], index: 1, kind: input, shape index: {}]   ;;  %s1847_s3 = inlined_call_operand.vmem [shape: f32[1,128], index: 3, kind: input, shape index: {}]   ;;  %s1848_s5 = inlined_call_operand.vmem [shape: f32[1,128], index: 5, kind: input, shape index: {}]   ;;  %s1849_s11 = inlined_call_operand.vmem [shape: bf16[128,128], index: 11, kind: input, shape index: {}]   ;;  %s1850_s10 = inlined_call_operand.vmem [shape: bf16[128,128], index: 10, kind: input, shape index: {}]   ;;  %s1851_s7 = inlined_call_operand.vmem [shape: f32[1,128], index: 7, kind: input, shape index: {}]   ;;  %s1852_s6 = inlined_call_operand.vmem [shape: f32[1,128], index: 6, kind: input, shape index: {}]   ;;  %s1853_s9 = inlined_call_operand.vmem [shape: f32[1,128], index: 9, kind: input, shape index: {}]   ;;  %s1854_s8 = inlined_call_operand.vmem [shape: f32[1,128], index: 8, kind: input, shape index: {}]   ;;  %s1855_s12 = inlined_call_operand.vmem [shape: f32[1,128], index: 12, kind: input, shape index: {}]   ;;  %s1856_s13 = inlined_call_operand.vmem [shape: f32[8,128], index: 13, kind: output, shape index: {}]  }
   0x1   :  { %v1361_v0 = vld [vmem:[%s1843_s2 + $0x40] sm:$0xff]   ;;  %v1365_v4 = vld [vmem:[%s1843_s2 + $0x48] sm:$0xff]   ;;  %v1369_v8 = vld [vmem:[%s1843_s2 + $0x50] sm:$0xff]  }
   0x2   :  { %v1362_v1 = vld [vmem:[%s1843_s2] sm:$0xff]   ;;  %1202 = vmatprep.subr.bf16.mxu0 %v1361_v0  ;;  %v1366_v5 = vld [vmem:[%s1843_s2 + $0x8] sm:$0xff]   ;;  %v1370_v9 = vld [vmem:[%s1843_s2 + $0x10] sm:$0xff]  }
   0x3   :  { %v1363_v2 = vld [vmem:[%s1843_s2 + $0xc0] sm:$0xff]   ;;  %1203 = vmatpush3.bf16.msra.mxu0 %v1362_v1  ;;  %v1367_v6 = vld [vmem:[%s1843_s2 + $0xc8] sm:$0xff]   ;;  %v1371_v10 = vld [vmem:[%s1843_s2 + $0xd0] sm:$0xff]  }
   0x4   :  { %v1364_v3 = vld [vmem:[%s1843_s2 + $0x80] sm:$0xff]   ;;  %1224 = vmatprep.subr.bf16.mxu1 %v1363_v2  ;;  %1204 = vmatprep.subr.bf16.mxu0 %v1365_v4  ;;  %v1368_v7 = vld [vmem:[%s1843_s2 + $0x88] sm:$0xff]   ;;  %v1372_v11 = vld [vmem:[%s1843_s2 + $0x90] sm:$0xff]  }
   0x5   :  { %1225 = vmatpush3.bf16.msra.mxu1 %v1364_v3  ;;  %v1373_v12 = vld [vmem:[%s1843_s2 + $0x58] sm:$0xff]   ;;  %v1377_v16 = vld [vmem:[%s1843_s2 + $0x60] sm:$0xff]   ;;  %v1381_v20 = vld [vmem:[%s1843_s2 + $0x68] sm:$0xff]  }
   0x6   :  { %1226 = vmatprep.subr.bf16.mxu1 %v1367_v6  ;;  %v1374_v13 = vld [vmem:[%s1843_s2 + $0x18] sm:$0xff]   ;;  %v1378_v17 = vld [vmem:[%s1843_s2 + $0x20] sm:$0xff]   ;;  %v1382_v21 = vld [vmem:[%s1843_s2 + $0x28] sm:$0xff]  }
   0x7   :  { %1205 = vmatpush3.bf16.msra.mxu0 %v1366_v5  ;;  %v1375_v14 = vld [vmem:[%s1843_s2 + $0xd8] sm:$0xff]   ;;  %v1379_v18 = vld [vmem:[%s1843_s2 + $0xe0] sm:$0xff]   ;;  %v1383_v22 = vld [vmem:[%s1843_s2 + $0xe8] sm:$0xff]  }
   0x8   :  { %1206 = vmatprep.subr.bf16.mxu0 %v1369_v8  ;;  %v1376_v15 = vld [vmem:[%s1843_s2 + $0x98] sm:$0xff]   ;;  %v1380_v19 = vld [vmem:[%s1843_s2 + $0xa0] sm:$0xff]   ;;  %v1384_v23 = vld [vmem:[%s1843_s2 + $0xa8] sm:$0xff]  }
   0x9   :  { %1227 = vmatpush3.bf16.msra.mxu1 %v1368_v7  ;;  %v1385_v24 = vld [vmem:[%s1843_s2 + $0x70] sm:$0xff]   ;;  %v1389_v28 = vld [vmem:[%s1843_s2 + $0x78] sm:$0xff]   ;;  %v45_v31 = vld [vmem:[%s1844_s0] sm:$0xff] }
   0xa   :  { %1228 = vmatprep.subr.bf16.mxu1 %v1371_v10  ;;  %v1386_v25 = vld [vmem:[%s1843_s2 + $0x30] sm:$0xff]   ;;  %v1390_v29 = vld [vmem:[%s1843_s2 + $0x38] sm:$0xff]   ;;  %v1105_v32 = vcombine.low %v45_v31, %v45_v31  ;;  %v1106_v33 = vcombine.high %v45_v31, %v45_v31  ;;  %v1395_v35 = vld [vmem:[%s1843_s2 + $0x140] sm:$0xff]  }
   0xb   :  { %1207 = vmatpush3.bf16.msra.mxu0 %v1370_v9  ;;  %v1387_v26 = vld [vmem:[%s1843_s2 + $0xf0] sm:$0xff]   ;;  %v1391_v30 = vld [vmem:[%s1843_s2 + $0xf8] sm:$0xff]   ;;  %v46_v36 = vld [vmem:[%s1844_s0 + $0x8] sm:$0xff]  ;;  %v1453_v9 = vmov 0.0  }
   0xc   :  { %1208 = vmatprep.subr.bf16.mxu0 %v1373_v12  ;;  %v1388_v27 = vld [vmem:[%s1843_s2 + $0xb0] sm:$0xff]   ;;  %v1394_v34 = vld [vmem:[%s1843_s2 + $0xb8] sm:$0xff]   ;;  %628 = vmatprep.mubr.bf16.mxu0 %v1106_v33  ;;  %v1107_v37 = vcombine.low %v46_v36, %v46_v36  ;;  %v1108_v38 = vcombine.high %v46_v36, %v46_v36  ;;  %v1398_v39 = vld [vmem:[%s1843_s2 + $0x100] sm:$0xff]  }
   0xd   :  { %1229 = vmatpush3.bf16.msra.mxu1 %v1372_v11  ;;  %v1399_v40 = vld [vmem:[%s1843_s2 + $0x1c0] sm:$0xff]   ;;  %v1401_v42 = vld [vmem:[%s1843_s2 + $0x148] sm:$0xff]   ;;  %v1405_v46 = vld [vmem:[%s1843_s2 + $0x150] sm:$0xff]  }
   0xe   :  { %1230 = vmatprep.subr.bf16.mxu1 %v1375_v14  ;;  %668 = vmatprep.mubr.bf16.mxu1 %v1108_v38  ;;  %v1400_v41 = vld [vmem:[%s1843_s2 + $0x180] sm:$0xff]   ;;  %v1402_v43 = vld [vmem:[%s1843_s2 + $0x108] sm:$0xff]   ;;  %v1406_v47 = vld [vmem:[%s1843_s2 + $0x110] sm:$0xff]  }
   0xf   :  { %1209 = vmatpush3.bf16.msra.mxu0 %v1374_v13  ;;  %v1403_v44 = vld [vmem:[%s1843_s2 + $0x1c8] sm:$0xff]   ;;  %v1407_v48 = vld [vmem:[%s1843_s2 + $0x1d0] sm:$0xff]   ;;  %v1409_v50 = vld [vmem:[%s1843_s2 + $0x158] sm:$0xff]  }
  0x10   :  { %1210 = vmatprep.subr.bf16.mxu0 %v1377_v16  ;;  %v1404_v45 = vld [vmem:[%s1843_s2 + $0x188] sm:$0xff]   ;;  %v1408_v49 = vld [vmem:[%s1843_s2 + $0x190] sm:$0xff]   ;;  %v1410_v51 = vld [vmem:[%s1843_s2 + $0x118] sm:$0xff]  }
  0x11   :  { %1231 = vmatpush3.bf16.msra.mxu1 %v1376_v15  ;;  %v1411_v52 = vld [vmem:[%s1843_s2 + $0x1d8] sm:$0xff]   ;;  %v1413_v54 = vld [vmem:[%s1843_s2 + $0x160] sm:$0xff]   ;;  %v1417_v58 = vld [vmem:[%s1843_s2 + $0x168] sm:$0xff]  }
  0x12   :  { %1232 = vmatprep.subr.bf16.mxu1 %v1379_v18  ;;  %v1412_v53 = vld [vmem:[%s1843_s2 + $0x198] sm:$0xff]   ;;  %v1414_v55 = vld [vmem:[%s1843_s2 + $0x120] sm:$0xff]   ;;  %v1418_v59 = vld [vmem:[%s1843_s2 + $0x128] sm:$0xff]  }
  0x13   :  { %1211 = vmatpush3.bf16.msra.mxu0 %v1378_v17  ;;  %v1415_v56 = vld [vmem:[%s1843_s2 + $0x1e0] sm:$0xff]   ;;  %v1419_v60 = vld [vmem:[%s1843_s2 + $0x1e8] sm:$0xff]   ;;  %v1421_v62 = vld [vmem:[%s1843_s2 + $0x170] sm:$0xff]  }
  0x14   :  { %1212 = vmatprep.subr.bf16.mxu0 %v1381_v20  ;;  %v1416_v57 = vld [vmem:[%s1843_s2 + $0x1a0] sm:$0xff]   ;;  %v1420_v61 = vld [vmem:[%s1843_s2 + $0x1a8] sm:$0xff]   ;;  %v1422_v63 = vld [vmem:[%s1843_s2 + $0x130] sm:$0xff]  }
  0x15   :  { %1233 = vmatpush3.bf16.msra.mxu1 %v1380_v19  ;;  %v1423_v0 = vld [vmem:[%s1843_s2 + $0x1f0] sm:$0xff]   ;;  %v1425_v2 = vld [vmem:[%s1843_s2 + $0x178] sm:$0xff]   ;;  %v1433_v13 = vld [vmem:[%s1845_s4] sm:$0xff]  }
  0x16   :  { %1234 = vmatprep.subr.bf16.mxu1 %v1383_v22  ;;  %v1424_v1 = vld [vmem:[%s1843_s2 + $0x1b0] sm:$0xff]   ;;  %v1426_v3 = vld [vmem:[%s1843_s2 + $0x138] sm:$0xff]   ;;  %v1434_v14 = vld [vmem:[%s1845_s4 + $0x8] sm:$0xff]  }
  0x17   :  { %1213 = vmatpush3.bf16.msra.mxu0 %v1382_v21  ;;  %v1427_v4 = vld [vmem:[%s1843_s2 + $0x1f8] sm:$0xff]   ;;  %v47_v5 = vld [vmem:[%s1844_s0 + $0x10] sm:$0xff]  ;;  %v757_v15 = vld [vmem:[%s1846_s1] sm:$0xf] }
  0x18   :  { %1214 = vmatprep.subr.bf16.mxu0 %v1385_v24  ;;  %v1109_v6 = vcombine.low %v47_v5, %v47_v5  ;;  %v1110_v7 = vcombine.high %v47_v5, %v47_v5  ;;  %v1430_v8 = vld [vmem:[%s1843_s2 + $0x1b8] sm:$0xff]   ;;  %v1104_v17 = vld [vmem:[%s1847_s3] ss:$0 sm:$0xff] }
  0x19   :  { %1235 = vmatpush3.bf16.msra.mxu1 %v1384_v23  ;;  %v48_v10 = vld [vmem:[%s1844_s0 + $0x18] sm:$0xff] }
  0x1a   :  { %1236 = vmatprep.subr.bf16.mxu1 %v1387_v26  ;;  %v1111_v11 = vcombine.low %v48_v10, %v48_v10  ;;  %v1112_v12 = vcombine.high %v48_v10, %v48_v10 }
  0x1b   :  { %1215 = vmatpush3.bf16.msra.mxu0 %v1386_v25 }
  0x1c   :  { %1216 = vmatprep.subr.bf16.mxu0 %v1389_v28 }
  0x1d   :  { %1237 = vmatpush3.bf16.msra.mxu1 %v1388_v27 }
  0x1e   :  { %1238 = vmatprep.subr.bf16.mxu1 %v1391_v30 }
  0x1f   :  { %1217 = vmatpush3.bf16.msra.mxu0 %v1390_v29 }
  0x20   :  { %1246 = vmatprep.subr.bf16.mxu0 %v1395_v35 }
  0x21   :  { %1239 = vmatpush3.bf16.msra.mxu1 %v1394_v34 }
  0x22   :  { %629 = vmatmul.mubr.bf16.vlgmr.msra.gmra.mrb[0].mxu0 %v1105_v32  ;;  %1268 = vmatprep.subr.bf16.mxu1 %v1399_v40 }
  0x23   :  { %1247 = vmatpush3.bf16.msra.mxu0 %v1398_v39  ;;  %708 = vmatprep.mubr.bf16.mxu0 %v1110_v7 }
  0x24   :  { %669 = vmatmul.mubr.bf16.vlgmr.msra.gmra.mrb[0].mxu1 %v1107_v37  ;;  %1248 = vmatprep.subr.bf16.mxu0 %v1401_v42 }
  0x25   :  { %1269 = vmatpush3.bf16.msra.mxu1 %v1400_v41  ;;  %748 = vmatprep.mubr.bf16.mxu1 %v1112_v12  ;;  %v1177_v41 = vld [vmem:[%s1848_s5] ss:$0 sm:$0xff] }
  0x26   :  { %1270 = vmatprep.subr.bf16.mxu1 %v1403_v44 }
  0x27   :  { %1249 = vmatpush3.bf16.msra.mxu0 %v1402_v43 }
  0x28   :  { %1250 = vmatprep.subr.bf16.mxu0 %v1405_v46 }
  0x29   :  { %1271 = vmatpush3.bf16.msra.mxu1 %v1404_v45 }
  0x2a   :  { %1272 = vmatprep.subr.bf16.mxu1 %v1407_v48 }
  0x2b   :  { %1251 = vmatpush3.bf16.msra.mxu0 %v1406_v47 }
  0x2c   :  { %1252 = vmatprep.subr.bf16.mxu0 %v1409_v50 }
  0x2d   :  { %1273 = vmatpush3.bf16.msra.mxu1 %v1408_v49 }
  0x2e   :  { %1274 = vmatprep.subr.bf16.mxu1 %v1411_v52  ;;  %v1436_v52 = vld [vmem:[%s1850_s10] sm:$0xff]  }
  0x2f   :  { %1253 = vmatpush3.bf16.msra.mxu0 %v1410_v51  ;;  %v1435_v51 = vld [vmem:[%s1849_s11] sm:$0xff]  }
  0x30   :  { %1254 = vmatprep.subr.bf16.mxu0 %v1413_v54  ;;  %v1438_v54 = vld [vmem:[%s1850_s10 + $0x8] sm:$0xff]  }
  0x31   :  { %1275 = vmatpush3.bf16.msra.mxu1 %v1412_v53  ;;  %v1437_v53 = vld [vmem:[%s1849_s11 + $0x8] sm:$0xff]  }
  0x32   :  { %1276 = vmatprep.subr.bf16.mxu1 %v1415_v56  ;;  %v1440_v56 = vld [vmem:[%s1850_s10 + $0x10] sm:$0xff]  }
  0x33   :  { %1255 = vmatpush3.bf16.msra.mxu0 %v1414_v55  ;;  %v1439_v55 = vld [vmem:[%s1849_s11 + $0x10] sm:$0xff]  }
  0x34   :  { %1256 = vmatprep.subr.bf16.mxu0 %v1417_v58  ;;  %v1442_v58 = vld [vmem:[%s1850_s10 + $0x18] sm:$0xff]  }
  0x35   :  { %1277 = vmatpush3.bf16.msra.mxu1 %v1416_v57  ;;  %v1441_v57 = vld [vmem:[%s1849_s11 + $0x18] sm:$0xff]  }
  0x36   :  { %1278 = vmatprep.subr.bf16.mxu1 %v1419_v60  ;;  %v1444_v60 = vld [vmem:[%s1850_s10 + $0x20] sm:$0xff]  }
  0x37   :  { %1257 = vmatpush3.bf16.msra.mxu0 %v1418_v59  ;;  %v1443_v59 = vld [vmem:[%s1849_s11 + $0x20] sm:$0xff]  }
  0x38   :  { %1258 = vmatprep.subr.bf16.mxu0 %v1421_v62  ;;  %v1446_v62 = vld [vmem:[%s1850_s10 + $0x28] sm:$0xff]  }
  0x39   :  { %1279 = vmatpush3.bf16.msra.mxu1 %v1420_v61  ;;  %v1445_v61 = vld [vmem:[%s1849_s11 + $0x28] sm:$0xff]  }
  0x3a   :  { %1280 = vmatprep.subr.bf16.mxu1 %v1423_v0  ;;  %v1448_v0 = vld [vmem:[%s1850_s10 + $0x30] sm:$0xff]  }
  0x3b   :  { %1259 = vmatpush3.bf16.msra.mxu0 %v1422_v63  ;;  %v1447_v63 = vld [vmem:[%s1849_s11 + $0x30] sm:$0xff]  }
  0x3c   :  { %1260 = vmatprep.subr.bf16.mxu0 %v1425_v2  ;;  %v1450_v2 = vld [vmem:[%s1850_s10 + $0x38] sm:$0xff]  }
  0x3d   :  { %1281 = vmatpush3.bf16.msra.mxu1 %v1424_v1  ;;  %v1449_v1 = vld [vmem:[%s1849_s11 + $0x38] sm:$0xff]  }
  0x3e   :  { %1282 = vmatprep.subr.bf16.mxu1 %v1427_v4 }
  0x3f   :  { %1261 = vmatpush3.bf16.msra.mxu0 %v1426_v3 }
  0x40   :  { %1311 = vmatprep.subr.bf16.mxu0 %v1453_v9 }
  0x41   :  { %1283 = vmatpush3.bf16.msra.mxu1 %v1430_v8 }
  0x42   :  { %709 = vmatmul.mubr.bf16.vlgmr.msra.gmra.mrb[4].mxu0 %v1109_v6  ;;  %1319 = vmatprep.subr.bf16.mxu1 %v1453_v9 }
  0x43   :  { %1312 = vmatpush3.bf16.msra.mxu0 %v1433_v13  ;;  %1315 = vmatprep.mubr.msk.bf16.mxu0 %vm1454_vm0, %v1453_v9 }
  0x44   :  { %749 = vmatmul.mubr.bf16.vlgmr.msra.gmra.mrb[4].mxu1 %v1111_v11  ;;  %1313 = vmatprep.subr.bf16.mxu0 %v1453_v9 }
  0x45   :  { %1335 = vmatprep.mubr.msk.bf16.mxu1 %vm1454_vm0, %v1453_v9  ;;  %1320 = vmatpush3.bf16.msra.mxu1 %v1435_v51 }
  0x46   :  { %1321 = vmatprep.subr.bf16.mxu1 %v1453_v9 }
  0x47   :  { %1314 = vmatpush3.bf16.msra.mxu0 %v1434_v14 }
  0x48   :  { %1339 = vmatprep.subr.bf16.mxu0 %v1453_v9 }
  0x49   :  { %1322 = vmatpush3.bf16.msra.mxu1 %v1437_v53 }
  0x4a   :  { %1316 = vmatmul.mubr.msk.bf16.vlgmr.msra.gmra.mrb[8].mxu0 %vm781_vm1, %v757_v15  ;;  %1323 = vmatprep.subr.bf16.mxu1 %v1453_v9 }
  0x4b   :  { %1355 = vmatprep.mubr.msk.bf16.mxu0 %vm1454_vm0, %v1453_v9  ;;  %1340 = vmatpush3.bf16.msra.mxu0 %v1436_v52 }
  0x4c   :  { %1341 = vmatprep.subr.bf16.mxu0 %v1453_v9 }
  0x4d   :  { %1324 = vmatpush3.bf16.msra.mxu1 %v1439_v55 }
  0x4e   :  { %1325 = vmatprep.subr.bf16.mxu1 %v1453_v9 }
  0x4f   :  { %1342 = vmatpush3.bf16.msra.mxu0 %v1438_v54 }
  0x50   :  { %1343 = vmatprep.subr.bf16.mxu0 %v1453_v9 }
  0x51   :  { %1326 = vmatpush3.bf16.msra.mxu1 %v1441_v57 }
  0x52   :  { %1327 = vmatprep.subr.bf16.mxu1 %v1453_v9 }
  0x53   :  { %1344 = vmatpush3.bf16.msra.mxu0 %v1440_v56 }
  0x54   :  { %1345 = vmatprep.subr.bf16.mxu0 %v1453_v9 }
  0x55   :  { %1328 = vmatpush3.bf16.msra.mxu1 %v1443_v59 }
  0x56   :  { %1329 = vmatprep.subr.bf16.mxu1 %v1453_v9 }
  0x57   :  { %1346 = vmatpush3.bf16.msra.mxu0 %v1442_v58 }
  0x58   :  { %1347 = vmatprep.subr.bf16.mxu0 %v1453_v9 }
  0x59   :  { %1330 = vmatpush3.bf16.msra.mxu1 %v1445_v61 }
  0x5a   :  { %1331 = vmatprep.subr.bf16.mxu1 %v1453_v9 }
  0x5b   :  { %1348 = vmatpush3.bf16.msra.mxu0 %v1444_v60 }
  0x5c   :  { %1349 = vmatprep.subr.bf16.mxu0 %v1453_v9 }
  0x5d   :  { %1332 = vmatpush3.bf16.msra.mxu1 %v1447_v63 }
  0x5e   :  { %1333 = vmatprep.subr.bf16.mxu1 %v1453_v9 }
  0x5f   :  { %1350 = vmatpush3.bf16.msra.mxu0 %v1446_v62 }
  0x60   :  { %1351 = vmatprep.subr.bf16.mxu0 %v1453_v9 }
  0x61   :  { %1334 = vmatpush3.bf16.msra.mxu1 %v1449_v1 }
  0x63   :  { %1352 = vmatpush3.bf16.msra.mxu0 %v1448_v0 }
  0x64   :  { %1353 = vmatprep.subr.bf16.mxu0 %v1453_v9  ;;  %v1183_v9 = vld [vmem:[%s1851_s7] ss:$0 sm:$0xff] }
  0x67   :  { %1354 = vmatpush3.bf16.msra.mxu0 %v1450_v2 }
  0xf5   :  { %v1218_v16 = vpop.f32.mrb[0].mxu0 }
  0xf6   :  { %v1219_v18 = vpop.f32.mrb[1].mxu0 }
  0xf7   :  { %v1220_v19 = vadd.f32 %v1219_v18, %v1218_v16  ;;  %v1221_v20 = vpop.f32.mrb[2].mxu0  ;;  %v1240_v21 = vpop.f32.mrb[0].mxu1  ;;  %v1181_v18 = vld [vmem:[%s1852_s6] ss:$0 sm:$0xff] }
  0xf8   :  { %v1222_v22 = vpop.f32.mrb[3].mxu0  ;;  %v1241_v23 = vpop.f32.mrb[1].mxu1 }
  0xf9   :  { %v631_v24 = vadd.f32 %v1220_v19, %v1104_v17  ;;  %v1242_v25 = vadd.f32 %v1241_v23, %v1240_v21  ;;  %v1243_v26 = vpop.f32.mrb[2].mxu1  ;;  %v1184_v21 = vld [vmem:[%s1853_s9] ss:$0 sm:$0xff] }
  0xfa   :  { %v1244_v27 = vpop.f32.mrb[3].mxu1  ;;  %v1182_v22 = vld [vmem:[%s1854_s8] ss:$0 sm:$0xff] }
  0xfb   :  { %v671_v28 = vadd.f32 %v1242_v25, %v631_v24 }
 0x115   :  { %v1262_v29 = vpop.f32.mrb[4].mxu0 }
 0x116   :  { %v1263_v30 = vpop.f32.mrb[5].mxu0 }
 0x117   :  { %v1264_v31 = vadd.f32 %v1263_v30, %v1262_v29  ;;  %v1265_v32 = vpop.f32.mrb[6].mxu0  ;;  %v1284_v33 = vpop.f32.mrb[4].mxu1 }
 0x118   :  { %v1266_v34 = vpop.f32.mrb[7].mxu0  ;;  %v1285_v35 = vpop.f32.mrb[5].mxu1 }
 0x119   :  { %v711_v36 = vadd.f32 %v1264_v31, %v671_v28  ;;  %v1286_v37 = vadd.f32 %v1285_v35, %v1284_v33  ;;  %v1287_v38 = vpop.f32.mrb[6].mxu1  ;;  %v1201_v31 = vld [vmem:[%s1855_s12] ss:$0 sm:$0xff] }
 0x11a   :  { %v1288_v39 = vpop.f32.mrb[7].mxu1 }
 0x11b   :  { %v751_v40 = vadd.f32 %v1286_v37, %v711_v36 }
 0x11d   :  { %v819_v42 = vpop.f32.mrb[8].mxu0  ;;  %v1753_v48 = vmax.f32 %v751_v40, 0.0 }
 0x11e   :  { %v820_v43 = vadd.f32 %v1177_v41, %v819_v42  ;;  %v1317_v44 = vpop.f32.mrb[9].mxu0 }
 0x11f   :  { %v822_v45 = vpop.f32.mrb[10].mxu0  ;;  %v834_v50 = vmul.f32 %v1753_v48, %v1753_v48 }
 0x120   :  { %v1751_v46 = vmax.f32 %v820_v43, 0.0  ;;  %v1318_v47 = vpop.f32.mrb[11].mxu0 }
 0x122   :  { %826 = vadd.xlane.f32.xlu0 %v1751_v46  ;;  %v831_v49 = vmul.f32 %v1751_v46, %v1751_v46 }
 0x124   :  { %832 = vadd.xlane.f32.xlu1 %v831_v49 }
 0x126   :  { %828 = vadd.xlane.f32.xlu0 %v1753_v48 }
 0x128   :  { %835 = vadd.xlane.f32.xlu1 %v834_v50 }
 0x1af   :  { %v827_v3 = vpop.xlane.xlu0 %826 }
 0x1b1   :  { %v833_v4 = vpop.xlane.xlu1 %832 }
 0x1b3   :  { %v829_v5 = vpop.xlane.xlu0 %828 }
 0x1b4   :  { %v830_v6 = vadd.f32 %v829_v5, %v827_v3 }
 0x1b5   :  { %v836_v7 = vpop.xlane.xlu1 %835 }
 0x1b6   :  { %v838_v8 = vmul.f32 0.015625, %v830_v6  ;;  %v837_v10 = vadd.f32 %v836_v7, %v833_v4 }
 0x1b8   :  { %v840_v11 = vmul.f32 %v838_v8, %v838_v8  ;;  %v839_v12 = vmul.f32 0.015625, %v837_v10  ;;  %v844_v15 = vsub.f32 %v1751_v46, %v838_v8  ;;  %v879_v16 = vsub.f32 %v1753_v48, %v838_v8 }
 0x1ba   :  { %v841_v13 = vsub.f32 %v839_v12, %v840_v11 }
 0x1bc   :  { %v842_v14 = vadd.f32 1e-05, %v841_v13 }
 0x1be   :  { %1451 = vrsqrt.f32 %v842_v14 }
 0x1c8   :  { %v1452_v17 = vpop.eup %1451 }
 0x1c9   :  { %v880_v19 = vmul.f32 %v1452_v17, %v879_v16  ;;  %v845_v20 = vmul.f32 %v1452_v17, %v844_v15 }
 0x1cb   :  { %v888_v23 = vmul.f32 %v1183_v9, %v880_v19  ;;  %v853_v24 = vmul.f32 %v1181_v18, %v845_v20 }
 0x1cd   :  { %v896_v25 = vadd.f32 %v1184_v21, %v888_v23  ;;  %v861_v26 = vadd.f32 %v1182_v22, %v853_v24 }
 0x1cf   :  { %v897_v27 = vpack.c.bf16 %v896_v25, %v896_v25  ;;  %v862_v28 = vpack.c.bf16 %v861_v26, %v861_v26 }
 0x1d1   :  { %1336 = vmatmul.mubr.bf16.vlgmr.msra.gmra.mrb[8].mxu1 %v897_v27  ;;  %1356 = vmatmul.mubr.bf16.vlgmr.msra.gmra.mrb[12].mxu0 %v862_v28 }
 0x2a4   :  { %v996_v29 = vpop.f32.mrb[8].mxu1  ;;  %v1084_v30 = vpop.f32.mrb[12].mxu0 }
 0x2a5   :  { %v1085_v32 = vadd.f32 %v1084_v30, %v996_v29  ;;  %v1337_v33 = vpop.f32.mrb[9].mxu1  ;;  %v1357_v34 = vpop.f32.mrb[13].mxu0 }
 0x2a6   :  { %v999_v35 = vpop.f32.mrb[10].mxu1  ;;  %v1087_v36 = vpop.f32.mrb[14].mxu0 }
 0x2a7   :  { %v1097_v37 = vadd.f32 %v1201_v31, %v1085_v32  ;;  %v1338_v38 = vpop.f32.mrb[11].mxu1  ;;  %v1358_v39 = vpop.f32.mrb[15].mxu0 }
 0x2a9   :  { %v1098_v40 = vmax.f32 %v1097_v37, 0.0 }
 0x2ab   :  { %1099 = vst [vmem:[%s1856_s13] sm:$0xff] %v1098_v40 }

// kernel: _forward_impl.1
= control target key start
LH: loop header
LB: loop body
LE: loop exit
PB: predicated region body
PF: predicated region fallthrough
CT: control target
= control target key end

     0   :  { %vm1454_vm0 = vmmov 0   ;;  %vm781_vm1 = vcmask 261120   ;;  %s1843_s2 = inlined_call_operand.vmem [shape: bf16[1024,128], index: 2, kind: input, shape index: {}]   ;;  %s1844_s0 = inlined_call_operand.vmem [shape: bf16[8,1024], index: 0, kind: input, shape index: {}]   ;;  %s1845_s4 = inlined_call_operand.vmem [shape: bf16[32,128], index: 4, kind: input, shape index: {}]   ;;  %s1846_s1 = inlined_call_operand.vmem [shape: bf16[8,32], index: 1, kind: input, shape index: {}]   ;;  %s1847_s3 = inlined_call_operand.vmem [shape: f32[1,128], index: 3, kind: input, shape index: {}]   ;;  %s1848_s5 = inlined_call_operand.vmem [shape: f32[1,128], index: 5, kind: input, shape index: {}]   ;;  %s1849_s11 = inlined_call_operand.vmem [shape: bf16[128,128], index: 11, kind: input, shape index: {}]   ;;  %s1850_s10 = inlined_call_operand.vmem [shape: bf16[128,128], index: 10, kind: input, shape index: {}]   ;;  %s1851_s7 = inlined_call_operand.vmem [shape: f32[1,128], index: 7, kind: input, shape index: {}]   ;;  %s1852_s6 = inlined_call_operand.vmem [shape: f32[1,128], index: 6, kind: input, shape index: {}]   ;;  %s1853_s9 = inlined_call_operand.vmem [shape: f32[1,128], index: 9, kind: input, shape index: {}]   ;;  %s1854_s8 = inlined_call_operand.vmem [shape: f32[1,128], index: 8, kind: input, shape index: {}]   ;;  %s1855_s12 = inlined_call_operand.vmem [shape: f32[1,128], index: 12, kind: input, shape index: {}]   ;;  %s1856_s13 = inlined_call_operand.vmem [shape: f32[8,128], index: 13, kind: output, shape index: {}]  }
   0x1   :  { %v1361_v0 = vld [vmem:[%s1843_s2 + $0x40] sm:$0xff]   ;;  %v1365_v4 = vld [vmem:[%s1843_s2 + $0x48] sm:$0xff]   ;;  %v1369_v8 = vld [vmem:[%s1843_s2 + $0x50] sm:$0xff]  }
   0x2   :  { %v1362_v1 = vld [vmem:[%s1843_s2] sm:$0xff]   ;;  %1202 = vmatprep.subr.bf16.mxu0 %v1361_v0  ;;  %v1366_v5 = vld [vmem:[%s1843_s2 + $0x8] sm:$0xff]   ;;  %v1370_v9 = vld [vmem:[%s1843_s2 + $0x10] sm:$0xff]  }
   0x3   :  { %v1363_v2 = vld [vmem:[%s1843_s2 + $0xc0] sm:$0xff]   ;;  %1203 = vmatpush3.bf16.msra.mxu0 %v1362_v1  ;;  %v1367_v6 = vld [vmem:[%s1843_s2 + $0xc8] sm:$0xff]   ;;  %v1371_v10 = vld [vmem:[%s1843_s2 + $0xd0] sm:$0xff]  }
   0x4   :  { %v1364_v3 = vld [vmem:[%s1843_s2 + $0x80] sm:$0xff]   ;;  %1224 = vmatprep.subr.bf16.mxu1 %v1363_v2  ;;  %1204 = vmatprep.subr.bf16.mxu0 %v1365_v4  ;;  %v1368_v7 = vld [vmem:[%s1843_s2 + $0x88] sm:$0xff]   ;;  %v1372_v11 = vld [vmem:[%s1843_s2 + $0x90] sm:$0xff]  }
   0x5   :  { %1225 = vmatpush3.bf16.msra.mxu1 %v1364_v3  ;;  %v1373_v12 = vld [vmem:[%s1843_s2 + $0x58] sm:$0xff]   ;;  %v1377_v16 = vld [vmem:[%s1843_s2 + $0x60] sm:$0xff]   ;;  %v1381_v20 = vld [vmem:[%s1843_s2 + $0x68] sm:$0xff]  }
   0x6   :  { %1226 = vmatprep.subr.bf16.mxu1 %v1367_v6  ;;  %v1374_v13 = vld [vmem:[%s1843_s2 + $0x18] sm:$0xff]   ;;  %v1378_v17 = vld [vmem:[%s1843_s2 + $0x20] sm:$0xff]   ;;  %v1382_v21 = vld [vmem:[%s1843_s2 + $0x28] sm:$0xff]  }
   0x7   :  { %1205 = vmatpush3.bf16.msra.mxu0 %v1366_v5  ;;  %v1375_v14 = vld [vmem:[%s1843_s2 + $0xd8] sm:$0xff]   ;;  %v1379_v18 = vld [vmem:[%s1843_s2 + $0xe0] sm:$0xff]   ;;  %v1383_v22 = vld [vmem:[%s1843_s2 + $0xe8] sm:$0xff]  }
   0x8   :  { %1206 = vmatprep.subr.bf16.mxu0 %v1369_v8  ;;  %v1376_v15 = vld [vmem:[%s1843_s2 + $0x98] sm:$0xff]   ;;  %v1380_v19 = vld [vmem:[%s1843_s2 + $0xa0] sm:$0xff]   ;;  %v1384_v23 = vld [vmem:[%s1843_s2 + $0xa8] sm:$0xff]  }
   0x9   :  { %1227 = vmatpush3.bf16.msra.mxu1 %v1368_v7  ;;  %v1385_v24 = vld [vmem:[%s1843_s2 + $0x70] sm:$0xff]   ;;  %v1389_v28 = vld [vmem:[%s1843_s2 + $0x78] sm:$0xff]   ;;  %v45_v31 = vld [vmem:[%s1844_s0] sm:$0xff] }
   0xa   :  { %1228 = vmatprep.subr.bf16.mxu1 %v1371_v10  ;;  %v1386_v25 = vld [vmem:[%s1843_s2 + $0x30] sm:$0xff]   ;;  %v1390_v29 = vld [vmem:[%s1843_s2 + $0x38] sm:$0xff]   ;;  %v1105_v32 = vcombine.low %v45_v31, %v45_v31  ;;  %v1106_v33 = vcombine.high %v45_v31, %v45_v31  ;;  %v1395_v35 = vld [vmem:[%s1843_s2 + $0x140] sm:$0xff]  }
   0xb   :  { %1207 = vmatpush3.bf16.msra.mxu0 %v1370_v9  ;;  %v1387_v26 = vld [vmem:[%s1843_s2 + $0xf0] sm:$0xff]   ;;  %v1391_v30 = vld [vmem:[%s1843_s2 + $0xf8] sm:$0xff]   ;;  %v46_v36 = vld [vmem:[%s1844_s0 + $0x8] sm:$0xff]  ;;  %v1453_v9 = vmov 0.0  }
   0xc   :  { %1208 = vmatprep.subr.bf16.mxu0 %v1373_v12  ;;  %v1388_v27 = vld [vmem:[%s1843_s2 + $0xb0] sm:$0xff]   ;;  %v1394_v34 = vld [vmem:[%s1843_s2 + $0xb8] sm:$0xff]   ;;  %628 = vmatprep.mubr.bf16.mxu0 %v1106_v33  ;;  %v1107_v37 = vcombine.low %v46_v36, %v46_v36  ;;  %v1108_v38 = vcombine.high %v46_v36, %v46_v36  ;;  %v1398_v39 = vld [vmem:[%s1843_s2 + $0x100] sm:$0xff]  }
   0xd   :  { %1229 = vmatpush3.bf16.msra.mxu1 %v1372_v11  ;;  %v1399_v40 = vld [vmem:[%s1843_s2 + $0x1c0] sm:$0xff]   ;;  %v1401_v42 = vld [vmem:[%s1843_s2 + $0x148] sm:$0xff]   ;;  %v1405_v46 = vld [vmem:[%s1843_s2 + $0x150] sm:$0xff]  }
   0xe   :  { %1230 = vmatprep.subr.bf16.mxu1 %v1375_v14  ;;  %668 = vmatprep.mubr.bf16.mxu1 %v1108_v38  ;;  %v1400_v41 = vld [vmem:[%s1843_s2 + $0x180] sm:$0xff]   ;;  %v1402_v43 = vld [vmem:[%s1843_s2 + $0x108] sm:$0xff]   ;;  %v1406_v47 = vld [vmem:[%s1843_s2 + $0x110] sm:$0xff]  }
   0xf   :  { %1209 = vmatpush3.bf16.msra.mxu0 %v1374_v13  ;;  %v1403_v44 = vld [vmem:[%s1843_s2 + $0x1c8] sm:$0xff]   ;;  %v1407_v48 = vld [vmem:[%s1843_s2 + $0x1d0] sm:$0xff]   ;;  %v1409_v50 = vld [vmem:[%s1843_s2 + $0x158] sm:$0xff]  }
  0x10   :  { %1210 = vmatprep.subr.bf16.mxu0 %v1377_v16  ;;  %v1404_v45 = vld [vmem:[%s1843_s2 + $0x188] sm:$0xff]   ;;  %v1408_v49 = vld [vmem:[%s1843_s2 + $0x190] sm:$0xff]   ;;  %v1410_v51 = vld [vmem:[%s1843_s2 + $0x118] sm:$0xff]  }
  0x11   :  { %1231 = vmatpush3.bf16.msra.mxu1 %v1376_v15  ;;  %v1411_v52 = vld [vmem:[%s1843_s2 + $0x1d8] sm:$0xff]   ;;  %v1413_v54 = vld [vmem:[%s1843_s2 + $0x160] sm:$0xff]   ;;  %v1417_v58 = vld [vmem:[%s1843_s2 + $0x168] sm:$0xff]  }
  0x12   :  { %1232 = vmatprep.subr.bf16.mxu1 %v1379_v18  ;;  %v1412_v53 = vld [vmem:[%s1843_s2 + $0x198] sm:$0xff]   ;;  %v1414_v55 = vld [vmem:[%s1843_s2 + $0x120] sm:$0xff]   ;;  %v1418_v59 = vld [vmem:[%s1843_s2 + $0x128] sm:$0xff]  }
  0x13   :  { %1211 = vmatpush3.bf16.msra.mxu0 %v1378_v17  ;;  %v1415_v56 = vld [vmem:[%s1843_s2 + $0x1e0] sm:$0xff]   ;;  %v1419_v60 = vld [vmem:[%s1843_s2 + $0x1e8] sm:$0xff]   ;;  %v1421_v62 = vld [vmem:[%s1843_s2 + $0x170] sm:$0xff]  }
  0x14   :  { %1212 = vmatprep.subr.bf16.mxu0 %v1381_v20  ;;  %v1416_v57 = vld [vmem:[%s1843_s2 + $0x1a0] sm:$0xff]   ;;  %v1420_v61 = vld [vmem:[%s1843_s2 + $0x1a8] sm:$0xff]   ;;  %v1422_v63 = vld [vmem:[%s1843_s2 + $0x130] sm:$0xff]  }
  0x15   :  { %1233 = vmatpush3.bf16.msra.mxu1 %v1380_v19  ;;  %v1423_v0 = vld [vmem:[%s1843_s2 + $0x1f0] sm:$0xff]   ;;  %v1425_v2 = vld [vmem:[%s1843_s2 + $0x178] sm:$0xff]   ;;  %v1433_v13 = vld [vmem:[%s1845_s4] sm:$0xff]  }
  0x16   :  { %1234 = vmatprep.subr.bf16.mxu1 %v1383_v22  ;;  %v1424_v1 = vld [vmem:[%s1843_s2 + $0x1b0] sm:$0xff]   ;;  %v1426_v3 = vld [vmem:[%s1843_s2 + $0x138] sm:$0xff]   ;;  %v1434_v14 = vld [vmem:[%s1845_s4 + $0x8] sm:$0xff]  }
  0x17   :  { %1213 = vmatpush3.bf16.msra.mxu0 %v1382_v21  ;;  %v1427_v4 = vld [vmem:[%s1843_s2 + $0x1f8] sm:$0xff]   ;;  %v47_v5 = vld [vmem:[%s1844_s0 + $0x10] sm:$0xff]  ;;  %v757_v15 = vld [vmem:[%s1846_s1] sm:$0xf] }
  0x18   :  { %1214 = vmatprep.subr.bf16.mxu0 %v1385_v24  ;;  %v1109_v6 = vcombine.low %v47_v5, %v47_v5  ;;  %v1110_v7 = vcombine.high %v47_v5, %v47_v5  ;;  %v1430_v8 = vld [vmem:[%s1843_s2 + $0x1b8] sm:$0xff]   ;;  %v1104_v17 = vld [vmem:[%s1847_s3] ss:$0 sm:$0xff] }
  0x19   :  { %1235 = vmatpush3.bf16.msra.mxu1 %v1384_v23  ;;  %v48_v10 = vld [vmem:[%s1844_s0 + $0x18] sm:$0xff] }
  0x1a   :  { %1236 = vmatprep.subr.bf16.mxu1 %v1387_v26  ;;  %v1111_v11 = vcombine.low %v48_v10, %v48_v10  ;;  %v1112_v12 = vcombine.high %v48_v10, %v48_v10 }
  0x1b   :  { %1215 = vmatpush3.bf16.msra.mxu0 %v1386_v25 }
  0x1c   :  { %1216 = vmatprep.subr.bf16.mxu0 %v1389_v28 }
  0x1d   :  { %1237 = vmatpush3.bf16.msra.mxu1 %v1388_v27 }
  0x1e   :  { %1238 = vmatprep.subr.bf16.mxu1 %v1391_v30 }
  0x1f   :  { %1217 = vmatpush3.bf16.msra.mxu0 %v1390_v29 }
  0x20   :  { %1246 = vmatprep.subr.bf16.mxu0 %v1395_v35 }
  0x21   :  { %1239 = vmatpush3.bf16.msra.mxu1 %v1394_v34 }
  0x22   :  { %629 = vmatmul.mubr.bf16.vlgmr.msra.gmra.mrb[0].mxu0 %v1105_v32  ;;  %1268 = vmatprep.subr.bf16.mxu1 %v1399_v40 }
  0x23   :  { %1247 = vmatpush3.bf16.msra.mxu0 %v1398_v39  ;;  %708 = vmatprep.mubr.bf16.mxu0 %v1110_v7 }
  0x24   :  { %669 = vmatmul.mubr.bf16.vlgmr.msra.gmra.mrb[0].mxu1 %v1107_v37  ;;  %1248 = vmatprep.subr.bf16.mxu0 %v1401_v42 }
  0x25   :  { %1269 = vmatpush3.bf16.msra.mxu1 %v1400_v41  ;;  %748 = vmatprep.mubr.bf16.mxu1 %v1112_v12  ;;  %v1177_v41 = vld [vmem:[%s1848_s5] ss:$0 sm:$0xff] }
  0x26   :  { %1270 = vmatprep.subr.bf16.mxu1 %v1403_v44 }
  0x27   :  { %1249 = vmatpush3.bf16.msra.mxu0 %v1402_v43 }
  0x28   :  { %1250 = vmatprep.subr.bf16.mxu0 %v1405_v46 }
  0x29   :  { %1271 = vmatpush3.bf16.msra.mxu1 %v1404_v45 }
  0x2a   :  { %1272 = vmatprep.subr.bf16.mxu1 %v1407_v48 }
  0x2b   :  { %1251 = vmatpush3.bf16.msra.mxu0 %v1406_v47 }
  0x2c   :  { %1252 = vmatprep.subr.bf16.mxu0 %v1409_v50 }
  0x2d   :  { %1273 = vmatpush3.bf16.msra.mxu1 %v1408_v49 }
  0x2e   :  { %1274 = vmatprep.subr.bf16.mxu1 %v1411_v52  ;;  %v1436_v52 = vld [vmem:[%s1850_s10] sm:$0xff]  }
  0x2f   :  { %1253 = vmatpush3.bf16.msra.mxu0 %v1410_v51  ;;  %v1435_v51 = vld [vmem:[%s1849_s11] sm:$0xff]  }
  0x30   :  { %1254 = vmatprep.subr.bf16.mxu0 %v1413_v54  ;;  %v1438_v54 = vld [vmem:[%s1850_s10 + $0x8] sm:$0xff]  }
  0x31   :  { %1275 = vmatpush3.bf16.msra.mxu1 %v1412_v53  ;;  %v1437_v53 = vld [vmem:[%s1849_s11 + $0x8] sm:$0xff]  }
  0x32   :  { %1276 = vmatprep.subr.bf16.mxu1 %v1415_v56  ;;  %v1440_v56 = vld [vmem:[%s1850_s10 + $0x10] sm:$0xff]  }
  0x33   :  { %1255 = vmatpush3.bf16.msra.mxu0 %v1414_v55  ;;  %v1439_v55 = vld [vmem:[%s1849_s11 + $0x10] sm:$0xff]  }
  0x34   :  { %1256 = vmatprep.subr.bf16.mxu0 %v1417_v58  ;;  %v1442_v58 = vld [vmem:[%s1850_s10 + $0x18] sm:$0xff]  }
  0x35   :  { %1277 = vmatpush3.bf16.msra.mxu1 %v1416_v57  ;;  %v1441_v57 = vld [vmem:[%s1849_s11 + $0x18] sm:$0xff]  }
  0x36   :  { %1278 = vmatprep.subr.bf16.mxu1 %v1419_v60  ;;  %v1444_v60 = vld [vmem:[%s1850_s10 + $0x20] sm:$0xff]  }
  0x37   :  { %1257 = vmatpush3.bf16.msra.mxu0 %v1418_v59  ;;  %v1443_v59 = vld [vmem:[%s1849_s11 + $0x20] sm:$0xff]  }
  0x38   :  { %1258 = vmatprep.subr.bf16.mxu0 %v1421_v62  ;;  %v1446_v62 = vld [vmem:[%s1850_s10 + $0x28] sm:$0xff]  }
  0x39   :  { %1279 = vmatpush3.bf16.msra.mxu1 %v1420_v61  ;;  %v1445_v61 = vld [vmem:[%s1849_s11 + $0x28] sm:$0xff]  }
  0x3a   :  { %1280 = vmatprep.subr.bf16.mxu1 %v1423_v0  ;;  %v1448_v0 = vld [vmem:[%s1850_s10 + $0x30] sm:$0xff]  }
  0x3b   :  { %1259 = vmatpush3.bf16.msra.mxu0 %v1422_v63  ;;  %v1447_v63 = vld [vmem:[%s1849_s11 + $0x30] sm:$0xff]  }
  0x3c   :  { %1260 = vmatprep.subr.bf16.mxu0 %v1425_v2  ;;  %v1450_v2 = vld [vmem:[%s1850_s10 + $0x38] sm:$0xff]  }
  0x3d   :  { %1281 = vmatpush3.bf16.msra.mxu1 %v1424_v1  ;;  %v1449_v1 = vld [vmem:[%s1849_s11 + $0x38] sm:$0xff]  }
  0x3e   :  { %1282 = vmatprep.subr.bf16.mxu1 %v1427_v4 }
  0x3f   :  { %1261 = vmatpush3.bf16.msra.mxu0 %v1426_v3 }
  0x40   :  { %1311 = vmatprep.subr.bf16.mxu0 %v1453_v9 }
  0x41   :  { %1283 = vmatpush3.bf16.msra.mxu1 %v1430_v8 }
  0x42   :  { %709 = vmatmul.mubr.bf16.vlgmr.msra.gmra.mrb[4].mxu0 %v1109_v6  ;;  %1319 = vmatprep.subr.bf16.mxu1 %v1453_v9 }
  0x43   :  { %1312 = vmatpush3.bf16.msra.mxu0 %v1433_v13  ;;  %1315 = vmatprep.mubr.msk.bf16.mxu0 %vm1454_vm0, %v1453_v9 }
  0x44   :  { %749 = vmatmul.mubr.bf16.vlgmr.msra.gmra.mrb[4].mxu1 %v1111_v11  ;;  %1313 = vmatprep.subr.bf16.mxu0 %v1453_v9 }
  0x45   :  { %1335 = vmatprep.mubr.msk.bf16.mxu1 %vm1454_vm0, %v1453_v9  ;;  %1320 = vmatpush3.bf16.msra.mxu1 %v1435_v51 }
  0x46   :  { %1321 = vmatprep.subr.bf16.mxu1 %v1453_v9 }
  0x47   :  { %1314 = vmatpush3.bf16.msra.mxu0 %v1434_v14 }
  0x48   :  { %1339 = vmatprep.subr.bf16.mxu0 %v1453_v9 }
  0x49   :  { %1322 = vmatpush3.bf16.msra.mxu1 %v1437_v53 }
  0x4a   :  { %1316 = vmatmul.mubr.msk.bf16.vlgmr.msra.gmra.mrb[8].mxu0 %vm781_vm1, %v757_v15  ;;  %1323 = vmatprep.subr.bf16.mxu1 %v1453_v9 }
  0x4b   :  { %1355 = vmatprep.mubr.msk.bf16.mxu0 %vm1454_vm0, %v1453_v9  ;;  %1340 = vmatpush3.bf16.msra.mxu0 %v1436_v52 }
  0x4c   :  { %1341 = vmatprep.subr.bf16.mxu0 %v1453_v9 }
  0x4d   :  { %1324 = vmatpush3.bf16.msra.mxu1 %v1439_v55 }
  0x4e   :  { %1325 = vmatprep.subr.bf16.mxu1 %v1453_v9 }
  0x4f   :  { %1342 = vmatpush3.bf16.msra.mxu0 %v1438_v54 }
  0x50   :  { %1343 = vmatprep.subr.bf16.mxu0 %v1453_v9 }
  0x51   :  { %1326 = vmatpush3.bf16.msra.mxu1 %v1441_v57 }
  0x52   :  { %1327 = vmatprep.subr.bf16.mxu1 %v1453_v9 }
  0x53   :  { %1344 = vmatpush3.bf16.msra.mxu0 %v1440_v56 }
  0x54   :  { %1345 = vmatprep.subr.bf16.mxu0 %v1453_v9 }
  0x55   :  { %1328 = vmatpush3.bf16.msra.mxu1 %v1443_v59 }
  0x56   :  { %1329 = vmatprep.subr.bf16.mxu1 %v1453_v9 }
  0x57   :  { %1346 = vmatpush3.bf16.msra.mxu0 %v1442_v58 }
  0x58   :  { %1347 = vmatprep.subr.bf16.mxu0 %v1453_v9 }
  0x59   :  { %1330 = vmatpush3.bf16.msra.mxu1 %v1445_v61 }
  0x5a   :  { %1331 = vmatprep.subr.bf16.mxu1 %v1453_v9 }
  0x5b   :  { %1348 = vmatpush3.bf16.msra.mxu0 %v1444_v60 }
  0x5c   :  { %1349 = vmatprep.subr.bf16.mxu0 %v1453_v9 }
  0x5d   :  { %1332 = vmatpush3.bf16.msra.mxu1 %v1447_v63 }
  0x5e   :  { %1333 = vmatprep.subr.bf16.mxu1 %v1453_v9 }
  0x5f   :  { %1350 = vmatpush3.bf16.msra.mxu0 %v1446_v62 }
  0x60   :  { %1351 = vmatprep.subr.bf16.mxu0 %v1453_v9 }
  0x61   :  { %1334 = vmatpush3.bf16.msra.mxu1 %v1449_v1 }
  0x63   :  { %1352 = vmatpush3.bf16.msra.mxu0 %v1448_v0 }
  0x64   :  { %1353 = vmatprep.subr.bf16.mxu0 %v1453_v9  ;;  %v1183_v9 = vld [vmem:[%s1851_s7] ss:$0 sm:$0xff] }
  0x67   :  { %1354 = vmatpush3.bf16.msra.mxu0 %v1450_v2 }
  0xf5   :  { %v1218_v16 = vpop.f32.mrb[0].mxu0 }
  0xf6   :  { %v1219_v18 = vpop.f32.mrb[1].mxu0 }
  0xf7   :  { %v1220_v19 = vadd.f32 %v1219_v18, %v1218_v16  ;;  %v1221_v20 = vpop.f32.mrb[2].mxu0  ;;  %v1240_v21 = vpop.f32.mrb[0].mxu1  ;;  %v1181_v18 = vld [vmem:[%s1852_s6] ss:$0 sm:$0xff] }
  0xf8   :  { %v1222_v22 = vpop.f32.mrb[3].mxu0  ;;  %v1241_v23 = vpop.f32.mrb[1].mxu1 }
  0xf9   :  { %v631_v24 = vadd.f32 %v1220_v19, %v1104_v17  ;;  %v1242_v25 = vadd.f32 %v1241_v23, %v1240_v21  ;;  %v1243_v26 = vpop.f32.mrb[2].mxu1  ;;  %v1184_v21 = vld [vmem:[%s1853_s9] ss:$0 sm:$0xff] }
  0xfa   :  { %v1244_v27 = vpop.f32.mrb[3].mxu1  ;;  %v1182_v22 = vld [vmem:[%s1854_s8] ss:$0 sm:$0xff] }
  0xfb   :  { %v671_v28 = vadd.f32 %v1242_v25, %v631_v24 }
 0x115   :  { %v1262_v29 = vpop.f32.mrb[4].mxu0 }
 0x116   :  { %v1263_v30 = vpop.f32.mrb[5].mxu0 }
 0x117   :  { %v1264_v31 = vadd.f32 %v1263_v30, %v1262_v29  ;;  %v1265_v32 = vpop.f32.mrb[6].mxu0  ;;  %v1284_v33 = vpop.f32.mrb[4].mxu1 }
 0x118   :  { %v1266_v34 = vpop.f32.mrb[7].mxu0  ;;  %v1285_v35 = vpop.f32.mrb[5].mxu1 }
 0x119   :  { %v711_v36 = vadd.f32 %v1264_v31, %v671_v28  ;;  %v1286_v37 = vadd.f32 %v1285_v35, %v1284_v33  ;;  %v1287_v38 = vpop.f32.mrb[6].mxu1  ;;  %v1201_v31 = vld [vmem:[%s1855_s12] ss:$0 sm:$0xff] }
 0x11a   :  { %v1288_v39 = vpop.f32.mrb[7].mxu1 }
 0x11b   :  { %v751_v40 = vadd.f32 %v1286_v37, %v711_v36 }
 0x11d   :  { %v819_v42 = vpop.f32.mrb[8].mxu0  ;;  %v1753_v48 = vmax.f32 %v751_v40, 0.0 }
 0x11e   :  { %v820_v43 = vadd.f32 %v1177_v41, %v819_v42  ;;  %v1317_v44 = vpop.f32.mrb[9].mxu0 }
 0x11f   :  { %v822_v45 = vpop.f32.mrb[10].mxu0  ;;  %v834_v50 = vmul.f32 %v1753_v48, %v1753_v48 }
 0x120   :  { %v1751_v46 = vmax.f32 %v820_v43, 0.0  ;;  %v1318_v47 = vpop.f32.mrb[11].mxu0 }
 0x122   :  { %826 = vadd.xlane.f32.xlu0 %v1751_v46  ;;  %v831_v49 = vmul.f32 %v1751_v46, %v1751_v46 }
 0x124   :  { %832 = vadd.xlane.f32.xlu1 %v831_v49 }
 0x126   :  { %828 = vadd.xlane.f32.xlu0 %v1753_v48 }
 0x128   :  { %835 = vadd.xlane.f32.xlu1 %v834_v50 }
 0x1af   :  { %v827_v3 = vpop.xlane.xlu0 %826 }
 0x1b1   :  { %v833_v4 = vpop.xlane.xlu1 %832 }
 0x1b3   :  { %v829_v5 = vpop.xlane.xlu0 %828 }
 0x1b4   :  { %v830_v6 = vadd.f32 %v829_v5, %v827_v3 }
 0x1b5   :  { %v836_v7 = vpop.xlane.xlu1 %835 }
 0x1b6   :  { %v838_v8 = vmul.f32 0.015625, %v830_v6  ;;  %v837_v10 = vadd.f32 %v836_v7, %v833_v4 }
 0x1b8   :  { %v840_v11 = vmul.f32 %v838_v8, %v838_v8  ;;  %v839_v12 = vmul.f32 0.015625, %v837_v10  ;;  %v844_v15 = vsub.f32 %v1751_v46, %v838_v8  ;;  %v879_v16 = vsub.f32 %v1753_v48, %v838_v8 }
 0x1ba   :  { %v841_v13 = vsub.f32 %v839_v12, %v840_v11 }
 0x1bc   :  { %v842_v14 = vadd.f32 1e-05, %v841_v13 }
 0x1be   :  { %1451 = vrsqrt.f32 %v842_v14 }
 0x1c8   :  { %v1452_v17 = vpop.eup %1451 }
 0x1c9   :  { %v880_v19 = vmul.f32 %v1452_v17, %v879_v16  ;;  %v845_v20 = vmul.f32 %v1452_v17, %v844_v15 }
 0x1cb   :  { %v888_v23 = vmul.f32 %v1183_v9, %v880_v19  ;;  %v853_v24 = vmul.f32 %v1181_v18, %v845_v20 }
 0x1cd   :  { %v896_v25 = vadd.f32 %v1184_v21, %v888_v23  ;;  %v861_v26 = vadd.f32 %v1182_v22, %v853_v24 }
 0x1cf   :  { %v897_v27 = vpack.c.bf16 %v896_v25, %v896_v25  ;;  %v862_v28 = vpack.c.bf16 %v861_v26, %v861_v26 }
 0x1d1   :  { %1336 = vmatmul.mubr.bf16.vlgmr.msra.gmra.mrb[8].mxu1 %v897_v27  ;;  %1356 = vmatmul.mubr.bf16.vlgmr.msra.gmra.mrb[12].mxu0 %v862_v28 }
 0x2a4   :  { %v996_v29 = vpop.f32.mrb[8].mxu1  ;;  %v1084_v30 = vpop.f32.mrb[12].mxu0 }
 0x2a5   :  { %v1085_v32 = vadd.f32 %v1084_v30, %v996_v29  ;;  %v1337_v33 = vpop.f32.mrb[9].mxu1  ;;  %v1357_v34 = vpop.f32.mrb[13].mxu0 }
 0x2a6   :  { %v999_v35 = vpop.f32.mrb[10].mxu1  ;;  %v1087_v36 = vpop.f32.mrb[14].mxu0 }
 0x2a7   :  { %v1097_v37 = vadd.f32 %v1201_v31, %v1085_v32  ;;  %v1338_v38 = vpop.f32.mrb[11].mxu1  ;;  %v1358_v39 = vpop.f32.mrb[15].mxu0 }
 0x2a9   :  { %v1098_v40 = vmax.f32 %v1097_v37, 0.0 }
 0x2ab   :  { %1099 = vst [vmem:[%s1856_s13] sm:$0xff] %v1098_v40 }

</bundles_post_ra>
